<compile_context>
chip_gen: v6e
topology: v6e:2x2x1
jax: 0.10.0
libtpu: 0.0.40
codegen_flags: <defaults>
</compile_context>

<pallas_src>
import functools

import jax
import jax.numpy as jnp
from jax.experimental import pallas as pl
from jax.experimental.pallas import tpu as pltpu


def attention_in_bag_kernel(bag_ref, w1_ref, b1_ref, w2_ref, out_ref):
    """One grid step processes BT bags packed as BT*N rows.

    bag_ref : (BT*N, Din)  f32   instances of BT bags, row-major
    w1_ref  : (Din, Dout)  f32   (resident across grid steps)
    b1_ref  : (1, Dout)    f32
    w2_ref  : (1, Dout)    f32   (lane-dense; e computed on VPU, not MXU)
    out_ref : (BT, Dout)   f32
    """
    bt, dout = out_ref.shape
    n = bag_ref.shape[0] // bt  # instances per bag

    x = bag_ref[...]  # (BT*N, Din)

    # ascend_dim: Linear(Din -> Dout) + LeakyReLU(0.2), one big MXU matmul.
    h = jnp.dot(x, w1_ref[...], preferred_element_type=jnp.float32)
    h = h + b1_ref[...]                       # broadcast (1, Dout)
    h = jnp.where(h > 0, h, 0.2 * h)          # LeakyReLU(0.2)  (BT*N, Dout)

    # Regroup rows per bag: (BT*N, Dout) -> (BT, N, Dout).  N is a multiple of
    # the sublane tile (8) and Dout of the lane tile (128), so this is a relabel.
    h3 = h.reshape(bt, n, dout)

    # compute_e: width-1 linear done as VPU multiply + lane (XLU) reduce.
    # b2 is omitted: softmax(e + c) == softmax(e).
    w2 = w2_ref[...].reshape(1, 1, dout)
    e = jnp.sum(h3 * w2, axis=-1, keepdims=True)          # (BT, N, 1)

    # Per-bag softmax over the N instances.
    m = jnp.max(e, axis=1, keepdims=True)                  # (BT, 1, 1)
    p = jnp.exp(e - m)                                     # (BT, N, 1)
    denom = jnp.sum(p, axis=1, keepdims=True)              # (BT, 1, 1)
    alpha = p * pl.reciprocal(denom, approx=True)          # (BT, N, 1)

    # x = alpha @ h  per bag.
    out_ref[...] = jnp.sum(alpha * h3, axis=1)             # (BT, Dout)


def prepare_params(w1, b1, w2, b2=None):
    """One-time weight prep (cast/reshape hoisted out of the per-call path).

    w1: (Din, Dout), b1: (Dout,), w2: (Dout,).  b2 is accepted for API parity
    but dropped: it cancels exactly in the softmax.
    """
    del b2  # shift-invariance of softmax makes it a no-op
    dout = w1.shape[1]
    return (
        jnp.asarray(w1, jnp.float32),
        jnp.asarray(b1, jnp.float32).reshape(1, dout),
        jnp.asarray(w2, jnp.float32).reshape(1, dout),
    )


@functools.partial(jax.jit, static_argnames=("bags_per_step",))
def attention_in_bag_batched(bags, params, *, bags_per_step=32):
    """bags: (B, N, Din) -> (B, Dout).  Applies AttentionInBag to every bag."""
    w1, b1, w2 = params
    b, n, din = bags.shape
    dout = w1.shape[1]

    bt = bags_per_step
    b_pad = pl.cdiv(b, bt) * bt
    bags = bags.astype(jnp.float32)
    if b_pad != b:
        bags = jnp.pad(bags, ((0, b_pad - b), (0, 0), (0, 0)))

    # Flatten to (B_pad*N, Din): one lane/sublane-friendly 2-D slab; each grid
    # step pulls a (BT*N, Din) block (auto double-buffered by BlockSpec).
    flat = bags.reshape(b_pad * n, din)

    grid = (b_pad // bt,)
    out = pl.pallas_call(
        attention_in_bag_kernel,
        out_shape=jax.ShapeDtypeStruct((b_pad, dout), jnp.float32),
        grid_spec=pltpu.PrefetchScalarGridSpec(
            num_scalar_prefetch=0,
            grid=grid,
            in_specs=[
                pl.BlockSpec((bt * n, din), lambda i: (i, 0)),   # per-step bag tile
                pl.BlockSpec((din, dout), lambda i: (0, 0)),     # W1 resident
                pl.BlockSpec((1, dout), lambda i: (0, 0)),       # b1 resident
                pl.BlockSpec((1, dout), lambda i: (0, 0)),       # w2 resident
            ],
            out_specs=pl.BlockSpec((bt, dout), lambda i: (i, 0)),
        ),
        compiler_params=pltpu.CompilerParams(
            dimension_semantics=("parallel",),  # bag tiles are independent (v7x 2 TCs)
        ),
    )(flat, w1, b1, w2)

    return out[:b]


def _ref_single(bag, w1, b1, w2, b2):
    # Pure-JAX reference matching the PyTorch module (b2 included here).
    h = bag.astype(jnp.float32) @ w1 + b1
    h = jnp.where(h > 0, h, 0.2 * h)
    e = (h @ w2.reshape(-1, 1) + b2).reshape(1, -1)
    alpha = jax.nn.softmax(e, axis=1)
    return (alpha @ h)[0]


if __name__ == "__main__":
    # Forward-implied shapes: bags of N=8 instances, agg_in_len=32,
    # agg_out_len=128; B=50 bags (exercises the padding path, grid=(2,)).
    B, N, AGG_IN, AGG_OUT = 50, 8, 32, 128
    BT = 32  # bags per grid step -> 256 MXU rows per matmul

    key = jax.random.PRNGKey(0)
    k_bag, k_w1, k_b1, k_w2, k_b2 = jax.random.split(key, 5)

    bags = jax.random.normal(k_bag, (B, N, AGG_IN), dtype=jnp.float32)

    # nn.Linear-style U(-1/sqrt(fan_in), +1/sqrt(fan_in)) init.
    lim1 = 1.0 / (AGG_IN ** 0.5)
    w1 = jax.random.uniform(k_w1, (AGG_IN, AGG_OUT), minval=-lim1, maxval=lim1)
    b1 = jax.random.uniform(k_b1, (AGG_OUT,), minval=-lim1, maxval=lim1)
    lim2 = 1.0 / (AGG_OUT ** 0.5)
    w2 = jax.random.uniform(k_w2, (AGG_OUT,), minval=-lim2, maxval=lim2)
    b2 = jax.random.uniform(k_b2, (1,), minval=-lim2, maxval=lim2)

    params = prepare_params(w1, b1, w2, b2)  # cast/reshape once, reused per call

    out = attention_in_bag_batched(bags, params, bags_per_step=BT)
    out = jax.block_until_ready(out)

    ref = jax.vmap(lambda bag: _ref_single(bag, w1, b1, w2, b2))(bags)

    assert out.shape == (B, AGG_OUT), out.shape
    # approx=True reciprocal (EUP vrcp) -> slightly looser tolerance than 1e-5.
    assert jnp.allclose(out, ref, atol=2e-3, rtol=2e-3), (
        float(jnp.max(jnp.abs(out - ref)))
    )

    print("KERNEL_OK")
</pallas_src>

<mosaic_0001>
module attributes {stable_mosaic.version = 11 : i64} {
  func.func @attention_in_bag_kernel(%arg0: i32, %arg1: memref<256x32xf32, #tpu.memory_space<vmem>>, %arg2: memref<32x128xf32, #tpu.memory_space<vmem>>, %arg3: memref<1x128xf32, #tpu.memory_space<vmem>>, %arg4: memref<1x128xf32, #tpu.memory_space<vmem>>, %arg5: memref<32x128xf32, #tpu.memory_space<vmem>>) attributes {dimension_semantics = [#tpu.dimension_semantics<parallel>], iteration_bounds = array<i64: 2>, scalar_prefetch = 0 : i64, scratch_operands = 0 : i64, tpu.core_type = #tpu.core_type<tc>, window_params = [{transform_indices = @transform_0, window_bounds = array<i64: 256, 32>}, {pipeline_mode = #tpu.pipeline_mode<synchronous>, transform_indices = @transform_1, window_bounds = array<i64: 32, 128>}, {pipeline_mode = #tpu.pipeline_mode<synchronous>, transform_indices = @transform_2, window_bounds = array<i64: 1, 128>}, {pipeline_mode = #tpu.pipeline_mode<synchronous>, transform_indices = @transform_3, window_bounds = array<i64: 1, 128>}, {transform_indices = @transform_4, window_bounds = array<i64: 32, 128>}]} {
    %c0 = arith.constant 0 : index
    %c0_0 = arith.constant 0 : index
    %0 = vector.load %arg1[%c0, %c0_0] : memref<256x32xf32, #tpu.memory_space<vmem>>, vector<256x32xf32>
    %c0_1 = arith.constant 0 : index
    %c0_2 = arith.constant 0 : index
    %1 = vector.load %arg2[%c0_1, %c0_2] : memref<32x128xf32, #tpu.memory_space<vmem>>, vector<32x128xf32>
    %cst = arith.constant dense<0.000000e+00> : vector<256x128xf32>
    %2 = tpu.matmul %0, %1, %cst {dimension_numbers = #tpu.dot_dimension_numbers<[1], [0], [0], [1], [0, 0, 1, 1], [], []>} : vector<256x32xf32>, vector<32x128xf32>, vector<256x128xf32> -> vector<256x128xf32>
    %c0_3 = arith.constant 0 : index
    %c0_4 = arith.constant 0 : index
    %3 = vector.load %arg3[%c0_3, %c0_4] : memref<1x128xf32, #tpu.memory_space<vmem>>, vector<1x128xf32>
    %4 = vector.broadcast %3 : vector<1x128xf32> to vector<256x128xf32>
    %5 = arith.addf %2, %4 : vector<256x128xf32>
    %cst_5 = arith.constant 0.000000e+00 : f32
    %6 = vector.broadcast %cst_5 : f32 to vector<256x128xf32>
    %7 = arith.cmpf ogt, %5, %6 : vector<256x128xf32>
    %cst_6 = arith.constant 2.000000e-01 : f32
    %8 = vector.broadcast %cst_6 : f32 to vector<256x128xf32>
    %9 = arith.mulf %8, %5 : vector<256x128xf32>
    %10 = arith.select %7, %5, %9 : vector<256x128xi1>, vector<256x128xf32>
    %11 = vector.shape_cast %10 : vector<256x128xf32> to vector<32x8x128xf32>
    %c0_7 = arith.constant 0 : index
    %c0_8 = arith.constant 0 : index
    %12 = vector.load %arg4[%c0_7, %c0_8] : memref<1x128xf32, #tpu.memory_space<vmem>>, vector<1x128xf32>
    %13 = vector.shape_cast %12 : vector<1x128xf32> to vector<1x1x128xf32>
    %14 = vector.broadcast %13 : vector<1x1x128xf32> to vector<32x8x128xf32>
    %15 = arith.mulf %11, %14 : vector<32x8x128xf32>
    %cst_9 = arith.constant dense<0.000000e+00> : vector<32x8xf32>
    %16 = vector.multi_reduction <add>, %15, %cst_9 [2] : vector<32x8x128xf32> to vector<32x8xf32>
    %17 = vector.shape_cast %16 : vector<32x8xf32> to vector<32x8x1xf32>
    %cst_10 = arith.constant dense<0xFF800000> : vector<32x1xf32>
    %18 = vector.multi_reduction <maximumf>, %17, %cst_10 [1] : vector<32x8x1xf32> to vector<32x1xf32>
    %19 = vector.shape_cast %18 : vector<32x1xf32> to vector<32x1x1xf32>
    %20 = vector.broadcast %19 : vector<32x1x1xf32> to vector<32x8x1xf32>
    %21 = arith.subf %17, %20 : vector<32x8x1xf32>
    %22 = math.exp %21 : vector<32x8x1xf32>
    %cst_11 = arith.constant dense<0.000000e+00> : vector<32x1xf32>
    %23 = vector.multi_reduction <add>, %22, %cst_11 [1] : vector<32x8x1xf32> to vector<32x1xf32>
    %24 = vector.shape_cast %23 : vector<32x1xf32> to vector<32x1x1xf32>
    %25 = tpu.reciprocal %24 {approx = true} : vector<32x1x1xf32> -> vector<32x1x1xf32>
    %26 = vector.broadcast %25 : vector<32x1x1xf32> to vector<32x8x1xf32>
    %27 = arith.mulf %22, %26 : vector<32x8x1xf32>
    %28 = vector.broadcast %27 : vector<32x8x1xf32> to vector<32x8x128xf32>
    %29 = arith.mulf %28, %11 : vector<32x8x128xf32>
    %cst_12 = arith.constant dense<0.000000e+00> : vector<32x128xf32>
    %30 = vector.multi_reduction <add>, %29, %cst_12 [1] : vector<32x8x128xf32> to vector<32x128xf32>
    %c0_13 = arith.constant 0 : index
    %c0_14 = arith.constant 0 : index
    %31 = vector.load %arg5[%c0_13, %c0_14] : memref<32x128xf32, #tpu.memory_space<vmem>>, vector<32x128xf32>
    tpu.vector_store %arg5[%c0_13, %c0_14], %30 {strides = array<i32>} : memref<32x128xf32, #tpu.memory_space<vmem>>, vector<32x128xf32>,
    return
  }
  func.func @transform_0(%arg0: i32) -> (i32, i32) {
    %c0_i32 = arith.constant 0 : i32
    %c0_i32_0 = arith.constant 0 : i32
    return %arg0, %c0_i32 : i32, i32
  }
  func.func @transform_1(%arg0: i32) -> (i32, i32) {
    %c0_i32 = arith.constant 0 : i32
    %c0_i32_0 = arith.constant 0 : i32
    %c0_i32_1 = arith.constant 0 : i32
    return %c0_i32, %c0_i32_0 : i32, i32
  }
  func.func @transform_2(%arg0: i32) -> (i32, i32) {
    %c0_i32 = arith.constant 0 : i32
    %c0_i32_0 = arith.constant 0 : i32
    %c0_i32_1 = arith.constant 0 : i32
    return %c0_i32, %c0_i32_0 : i32, i32
  }
  func.func @transform_3(%arg0: i32) -> (i32, i32) {
    %c0_i32 = arith.constant 0 : i32
    %c0_i32_0 = arith.constant 0 : i32
    %c0_i32_1 = arith.constant 0 : i32
    return %c0_i32, %c0_i32_0 : i32, i32
  }
  func.func @transform_4(%arg0: i32) -> (i32, i32) {
    %c0_i32 = arith.constant 0 : i32
    %c0_i32_0 = arith.constant 0 : i32
    return %arg0, %c0_i32 : i32, i32
  }
}

</mosaic_0001>

<bundles_post_ra>
// kernel: attention_in_bag_batched.1
= control target key start
LH: loop header
LB: loop body
LE: loop exit
PB: predicated region body
PF: predicated region fallthrough
CT: control target
= control target key end

     0   :  { %s1978_s15 = smov 0   ;;  %s2649_s0 = inlined_call_operand.vmem [shape: f32[512,32], index: 0, kind: input, shape index: {}]   ;;  %s2650_s1 = inlined_call_operand.vmem [shape: f32[32,128], index: 1, kind: input, shape index: {}]   ;;  %s2651_s2 = inlined_call_operand.vmem [shape: f32[1,128], index: 2, kind: input, shape index: {}]   ;;  %s2652_s3 = inlined_call_operand.vmem [shape: f32[1,128], index: 3, kind: input, shape index: {}]   ;;  %s2653_s4 = inlined_call_operand.vmem [shape: f32[64,128], index: 4, kind: output, shape index: {}]  }
   0x1 LB: > { %s1664_s16 = sadd.s32 4294967295, %s1951_s15   ;;  %p1668_p0 = scmp.ge.s32.totalorder %s1951_s15, 1  ;;  %s1951_s15 = sphi %s1978_s15, %s14_s15  }
   0x2   : > { %p163_p1 = scmp.lt.s32.totalorder %s1951_s15, 3 }
   0x4   : > { %p164_p2 = pnand %p1668_p0, %p163_p1 }
   0x6   : > { %167 = sbr.rel (%p164_p2) target bundleno = 595 (0x253), region = 36 }
   0xb   : > { %v236_v0 = vld [vmem:[%s2650_s1 + $0x18] sm:$0xff]  ;;  %v235_v1 = vld [vmem:[%s2650_s1 + $0x10] sm:$0xff]  ;;  %s1669_s21 = sshll.u32 %s1664_s16, 5  ;;  %v234_v2 = vld [vmem:[%s2650_s1 + $0x8] sm:$0xff]  ;;  %vm244_vm0 = vcmask 261120   ;;  %s2481_s8 = sshll.u32 %s1664_s16, 2 }
   0xc   : > { %1745 = vmatprep.subr.mxu0 %v236_v0  ;;  %1801 = vmatprep.subr.mxu1 %v236_v0  ;;  %p190_p3 = scmp.lt.s32.totalorder %s1669_s21, 63  ;;  %v233_v3 = vld [vmem:[%s2650_s1] sm:$0xff]  ;;  %p196_p4 = scmp.lt.s32.totalorder %s2481_s8, 7 }
   0xd   : > { %1746 = vmatpush3.msra.mxu0 %v236_v0  ;;  %1805 = vmatpush3.msra.mxu1 %v236_v0  ;;  %v2072_v36 = vld [vmem:[%s2651_s2] ss:$0 sm:$0xff] }
   0xe   : > { %1747 = vmatprep.subr.mxu0 %v235_v1  ;;  %1802 = vmatprep.subr.mxu1 %v235_v1  ;;  %s2696_s21 = smov (!%p190_p3, %s1669_s21), 63  ;;  %v2081_v49 = vld [vmem:[%s2652_s3] ss:$0 sm:$0xff]  ;;  %s2698_s8 = smov (!%p196_p4, %s2481_s8), 7 }
   0xf   : > { %1748 = vmatpush3.msra.mxu0 %v235_v1  ;;  %1806 = vmatpush3.msra.mxu1 %v235_v1  ;;  %s1670_s26 = sshll.u32 %s2696_s21, 3  ;;  %s1672_s9 = sshll.u32 %s2698_s8, 3 }
  0x10   : > { %1749 = vmatprep.subr.mxu0 %v234_v2  ;;  %1803 = vmatprep.subr.mxu1 %v234_v2  ;;  %s2003_s29 = scalar_lea.vmem %s2649_s0, %s1670_s26  ;;  %s2532_s12 = scalar_lea.vmem %s2653_s4, %s1672_s9 }
  0x11   : > { %1750 = vmatpush3.msra.mxu0 %v234_v2  ;;  %1807 = vmatpush3.msra.mxu1 %v234_v2  ;;  %v201_v4 = vld [vmem:[%s2003_s29] sm:$0xff]  ;;  %v202_v6 = vld [vmem:[%s2003_s29 + $0x8] sm:$0xff]  ;;  %v203_v8 = vld [vmem:[%s2003_s29 + $0x10] sm:$0xff] }
  0x12   : > { %1751 = vmatprep.subr.mxu0 %v233_v3  ;;  %1804 = vmatprep.subr.mxu1 %v233_v3  ;;  %v217_v5 = vld [vmem:[%s2003_s29 + $0x80] sm:$0xff]  ;;  %v218_v7 = vld [vmem:[%s2003_s29 + $0x88] sm:$0xff]  ;;  %v219_v9 = vld [vmem:[%s2003_s29 + $0x90] sm:$0xff] }
  0x13   : > { %1752 = vmatpush3.msra.mxu0 %v233_v3  ;;  %1808 = vmatpush3.msra.mxu1 %v233_v3  ;;  %v204_v10 = vld [vmem:[%s2003_s29 + $0x18] sm:$0xff]  ;;  %v205_v12 = vld [vmem:[%s2003_s29 + $0x20] sm:$0xff]  ;;  %v206_v14 = vld [vmem:[%s2003_s29 + $0x28] sm:$0xff] }
  0x14   : > { %1753 = vmatprep.mubr.msk.f32.mxu0 %vm244_vm0, %v201_v4  ;;  %1777 = vmatprep.mubr.msk.f32.mxu1 %vm244_vm0, %v217_v5  ;;  %v220_v11 = vld [vmem:[%s2003_s29 + $0x98] sm:$0xff]  ;;  %v221_v13 = vld [vmem:[%s2003_s29 + $0xa0] sm:$0xff]  ;;  %v222_v15 = vld [vmem:[%s2003_s29 + $0xa8] sm:$0xff] }
  0x15   : > { %1754 = vmatmul.mubr.msk.f32.vlgmr.msra.gmra.mxu0 %vm244_vm0, %v202_v6  ;;  %1778 = vmatmul.mubr.msk.f32.vlgmr.msra.gmra.mxu1 %vm244_vm0, %v218_v7  ;;  %v223_v16 = vld [vmem:[%s2003_s29 + $0xb0] sm:$0xff]  ;;  %v224_v18 = vld [vmem:[%s2003_s29 + $0xb8] sm:$0xff]  ;;  %v225_v20 = vld [vmem:[%s2003_s29 + $0xc0] sm:$0xff] }
  0x16   : > { %1756 = vmatprep.mubr.msk.f32.mxu0 %vm244_vm0, %v203_v8  ;;  %1780 = vmatprep.mubr.msk.f32.mxu1 %vm244_vm0, %v219_v9  ;;  %v207_v17 = vld [vmem:[%s2003_s29 + $0x30] sm:$0xff]  ;;  %v208_v19 = vld [vmem:[%s2003_s29 + $0x38] sm:$0xff]  ;;  %v209_v21 = vld [vmem:[%s2003_s29 + $0x40] sm:$0xff] }
  0x17   : > { %v226_v22 = vld [vmem:[%s2003_s29 + $0xc8] sm:$0xff]  ;;  %v227_v24 = vld [vmem:[%s2003_s29 + $0xd0] sm:$0xff]  ;;  %v228_v26 = vld [vmem:[%s2003_s29 + $0xd8] sm:$0xff] }
  0x18   : > { %v210_v23 = vld [vmem:[%s2003_s29 + $0x48] sm:$0xff]  ;;  %v211_v25 = vld [vmem:[%s2003_s29 + $0x50] sm:$0xff]  ;;  %v212_v27 = vld [vmem:[%s2003_s29 + $0x58] sm:$0xff] }
  0x19   : > { %1757 = vmatmul.mubr.msk.f32.gmra.mxu0 %vm244_vm0, %v204_v10  ;;  %1781 = vmatmul.mubr.msk.f32.gmra.mxu1 %vm244_vm0, %v220_v11  ;;  %v213_v28 = vld [vmem:[%s2003_s29 + $0x60] sm:$0xff]  ;;  %v214_v30 = vld [vmem:[%s2003_s29 + $0x68] sm:$0xff]  ;;  %v215_v32 = vld [vmem:[%s2003_s29 + $0x70] sm:$0xff] }
  0x1a   : > { %1759 = vmatprep.mubr.msk.f32.mxu0 %vm244_vm0, %v205_v12  ;;  %1783 = vmatprep.mubr.msk.f32.mxu1 %vm244_vm0, %v221_v13  ;;  %v229_v29 = vld [vmem:[%s2003_s29 + $0xe0] sm:$0xff]  ;;  %v230_v31 = vld [vmem:[%s2003_s29 + $0xe8] sm:$0xff]  ;;  %v231_v33 = vld [vmem:[%s2003_s29 + $0xf0] sm:$0xff] }
  0x1b   : > { %v216_v34 = vld [vmem:[%s2003_s29 + $0x78] sm:$0xff] }
  0x1c   : > { %v232_v35 = vld [vmem:[%s2003_s29 + $0xf8] sm:$0xff] }
  0x1d   : > { %1760 = vmatmul.mubr.msk.f32.gmra.mxu0 %vm244_vm0, %v206_v14  ;;  %1784 = vmatmul.mubr.msk.f32.gmra.mxu1 %vm244_vm0, %v222_v15 }
  0x1e   : > { %1786 = vmatprep.mubr.msk.f32.mxu1 %vm244_vm0, %v223_v16  ;;  %1762 = vmatprep.mubr.msk.f32.mxu0 %vm244_vm0, %v207_v17 }
  0x21   : > { %1787 = vmatmul.mubr.msk.f32.gmra.mxu1 %vm244_vm0, %v224_v18  ;;  %1763 = vmatmul.mubr.msk.f32.gmra.mxu0 %vm244_vm0, %v208_v19 }
  0x22   : > { %1789 = vmatprep.mubr.msk.f32.mxu1 %vm244_vm0, %v225_v20  ;;  %1765 = vmatprep.mubr.msk.f32.mxu0 %vm244_vm0, %v209_v21 }
  0x25   : > { %1790 = vmatmul.mubr.msk.f32.gmra.mxu1 %vm244_vm0, %v226_v22  ;;  %1766 = vmatmul.mubr.msk.f32.gmra.mxu0 %vm244_vm0, %v210_v23 }
  0x26   : > { %1792 = vmatprep.mubr.msk.f32.mxu1 %vm244_vm0, %v227_v24  ;;  %1768 = vmatprep.mubr.msk.f32.mxu0 %vm244_vm0, %v211_v25 }
  0x29   : > { %1793 = vmatmul.mubr.msk.f32.gmra.mxu1 %vm244_vm0, %v228_v26  ;;  %1769 = vmatmul.mubr.msk.f32.gmra.mxu0 %vm244_vm0, %v212_v27 }
  0x2a   : > { %1771 = vmatprep.mubr.msk.f32.mxu0 %vm244_vm0, %v213_v28  ;;  %1795 = vmatprep.mubr.msk.f32.mxu1 %vm244_vm0, %v229_v29 }
  0x2d   : > { %1772 = vmatmul.mubr.msk.f32.gmra.mxu0 %vm244_vm0, %v214_v30  ;;  %1796 = vmatmul.mubr.msk.f32.gmra.mxu1 %vm244_vm0, %v230_v31 }
  0x2e   : > { %1774 = vmatprep.mubr.msk.f32.mxu0 %vm244_vm0, %v215_v32  ;;  %1798 = vmatprep.mubr.msk.f32.mxu1 %vm244_vm0, %v231_v33 }
  0x31   : > { %1775 = vmatmul.mubr.msk.f32.gmra.mxu0 %vm244_vm0, %v216_v34  ;;  %1799 = vmatmul.mubr.msk.f32.gmra.mxu1 %vm244_vm0, %v232_v35 }
  0xd5   : > { %v1755_v37 = vpop.f32.mrf.mxu0  ;;  %v1779_v38 = vpop.f32.mrf.mxu1 }
  0xd6   : > { %v413_v39 = vadd.f32 %v1755_v37, %v2072_v36  ;;  %v493_v40 = vadd.f32 %v1779_v38, %v2072_v36 }
  0xd7   : > { %v407_v41 = vpop.f32.mrf.mxu0  ;;  %v487_v42 = vpop.f32.mrf.mxu1 }
  0xd8   : > { %v599_v43 = vmul.f32 0.2, %v413_v39  ;;  %v408_v44 = vadd.f32 %v2072_v36, %v407_v41  ;;  %v488_v45 = vadd.f32 %v2072_v36, %v487_v42  ;;  %v615_v46 = vmul.f32 0.2, %v493_v40 }
  0xd9   : > { %v1758_v47 = vpop.f32.mrf.mxu0  ;;  %v1782_v48 = vpop.f32.mrf.mxu1  ;;  %vm567_vm1 = vcmp.gt.f32.partialorder %v413_v39, 0.0  ;;  %vm583_vm2 = vcmp.gt.f32.partialorder %v493_v40, 0.0 }
  0xda   : > { %v614_v50 = vmul.f32 0.2, %v488_v45  ;;  %v423_v51 = vadd.f32 %v1758_v47, %v2072_v36  ;;  %v2084_v53 = vsel %vm567_vm1, %v413_v39, %v599_v43  ;;  %vm582_vm3 = vcmp.gt.f32.partialorder %v488_v45, 0.0 }
  0xdb   : > { %v417_v52 = vpop.f32.mrf.mxu0  ;;  %v497_v54 = vpop.f32.mrf.mxu1  ;;  %v598_v55 = vmul.f32 0.2, %v408_v44  ;;  %v670_v58 = vmul.f32 %v2081_v49, %v2084_v53  ;;  %v503_v59 = vadd.f32 %v1782_v48, %v2072_v36  ;;  %v2092_v61 = vsel %vm583_vm2, %v493_v40, %v615_v46 }
  0xdc   : > { %v601_v56 = vmul.f32 0.2, %v423_v51  ;;  %v418_v57 = vadd.f32 %v2072_v36, %v417_v52  ;;  %v2090_v60 = vsel %vm582_vm3, %v488_v45, %v614_v50  ;;  %vm569_vm4 = vcmp.gt.f32.partialorder %v423_v51, 0.0 }
  0xdd   : > { %v1761_v62 = vpop.f32.mrf.mxu0  ;;  %v1785_v63 = vpop.f32.mrf.mxu1  ;;  %703 = vadd.xlane.f32.xlu0 %v670_v58  ;;  %v685_v0 = vmul.f32 %v2081_v49, %v2090_v60  ;;  %vm566_vm5 = vcmp.gt.f32.partialorder %v408_v44, 0.0  ;;  %v498_v2 = vadd.f32 %v2072_v36, %v497_v54  ;;  %v686_v4 = vmul.f32 %v2081_v49, %v2092_v61 }
  0xde   : > { %v600_v1 = vmul.f32 0.2, %v418_v57  ;;  %v2097_v3 = vsel %vm569_vm4, %v423_v51, %v601_v56  ;;  %vm568_vm6 = vcmp.gt.f32.partialorder %v418_v57, 0.0  ;;  %v617_v7 = vmul.f32 0.2, %v503_v59 }
  0xdf   : > { %733 = vadd.xlane.f32.xlu1 %v685_v0  ;;  %v427_v5 = vpop.f32.mrf.mxu0  ;;  %v507_v6 = vpop.f32.mrf.mxu1  ;;  %v433_v8 = vadd.f32 %v1761_v62, %v2072_v36  ;;  %v2102_v9 = vsel %vm566_vm5, %v408_v44, %v598_v55  ;;  %v672_v10 = vmul.f32 %v2081_v49, %v2097_v3  ;;  %vm585_vm7 = vcmp.gt.f32.partialorder %v503_v59, 0.0 }
  0xe0   : > { %v616_v11 = vmul.f32 0.2, %v498_v2  ;;  %v428_v12 = vadd.f32 %v2072_v36, %v427_v5  ;;  %v2107_v13 = vsel %vm568_vm6, %v418_v57, %v600_v1  ;;  %v669_v14 = vmul.f32 %v2081_v49, %v2102_v9 }
  0xe1   : > { %735 = vadd.xlane.f32.xlu0 %v686_v4  ;;  %v1788_v15 = vpop.f32.mrf.mxu1  ;;  %vm584_vm8 = vcmp.gt.f32.partialorder %v498_v2, 0.0  ;;  %v1764_v16 = vpop.f32.mrf.mxu0  ;;  %v603_v17 = vmul.f32 0.2, %v433_v8  ;;  %v513_v18 = vadd.f32 %v1785_v63, %v2072_v36  ;;  %v2112_v19 = vsel %vm585_vm7, %v503_v59, %v617_v7 }
  0xe2   : > { %v671_v20 = vmul.f32 %v2081_v49, %v2107_v13  ;;  %vm571_vm9 = vcmp.gt.f32.partialorder %v433_v8, 0.0  ;;  %v602_v21 = vmul.f32 0.2, %v428_v12  ;;  %v523_v22 = vadd.f32 %v1788_v15, %v2072_v36 }
  0xe3   : > { %707 = vadd.xlane.f32.xlu1 %v672_v10  ;;  %v2117_v23 = vsel %vm584_vm8, %v498_v2, %v616_v11  ;;  %v517_v24 = vpop.f32.mrf.mxu1  ;;  %v688_v25 = vmul.f32 %v2081_v49, %v2112_v19  ;;  %v437_v26 = vpop.f32.mrf.mxu0  ;;  %vm570_vm10 = vcmp.gt.f32.partialorder %v428_v12, 0.0  ;;  %v619_v27 = vmul.f32 0.2, %v513_v18 }
  0xe4   : > { %v508_v28 = vadd.f32 %v2072_v36, %v507_v6  ;;  %v2122_v29 = vsel %vm571_vm9, %v433_v8, %v603_v17  ;;  %v687_v30 = vmul.f32 %v2081_v49, %v2117_v23  ;;  %vm587_vm11 = vcmp.gt.f32.partialorder %v513_v18, 0.0 }
  0xe5   : > { %701 = vadd.xlane.f32.xlu0 %v669_v14  ;;  %v621_v31 = vmul.f32 0.2, %v523_v22  ;;  %v518_v32 = vadd.f32 %v2072_v36, %v517_v24  ;;  %v2127_v33 = vsel %vm570_vm10, %v428_v12, %v602_v21  ;;  %v674_v34 = vmul.f32 %v2081_v49, %v2122_v29  ;;  %v1767_v35 = vpop.f32.mrf.mxu0  ;;  %v1791_v40 = vpop.f32.mrf.mxu1 }
  0xe6   : > { %vm589_vm12 = vcmp.gt.f32.partialorder %v523_v22, 0.0  ;;  %v618_v37 = vmul.f32 0.2, %v508_v28  ;;  %v443_v38 = vadd.f32 %v1764_v16, %v2072_v36  ;;  %v2132_v39 = vsel %vm587_vm11, %v513_v18, %v619_v27 }
  0xe7   : > { %705 = vadd.xlane.f32.xlu1 %v671_v20  ;;  %v673_v41 = vmul.f32 %v2081_v49, %v2127_v33  ;;  %vm586_vm13 = vcmp.gt.f32.partialorder %v508_v28, 0.0  ;;  %v620_v42 = vmul.f32 0.2, %v518_v32  ;;  %v533_v43 = vadd.f32 %v1791_v40, %v2072_v36  ;;  %v447_v46 = vpop.f32.mrf.mxu0  ;;  %v527_v51 = vpop.f32.mrf.mxu1 }
  0xe8   : > { %v2137_v44 = vsel %vm589_vm12, %v523_v22, %v621_v31  ;;  %v690_v45 = vmul.f32 %v2081_v49, %v2132_v39  ;;  %vm588_vm14 = vcmp.gt.f32.partialorder %v518_v32, 0.0  ;;  %v605_v47 = vmul.f32 0.2, %v443_v38 }
  0xe9   : > { %739 = vadd.xlane.f32.xlu0 %v688_v25  ;;  %v438_v48 = vadd.f32 %v2072_v36, %v437_v26  ;;  %v2142_v50 = vsel %vm586_vm13, %v508_v28, %v618_v37  ;;  %v692_v52 = vmul.f32 %v2081_v49, %v2137_v44  ;;  %vm573_vm15 = vcmp.gt.f32.partialorder %v443_v38, 0.0  ;;  %v1794_v58 = vpop.f32.mrf.mxu1  ;;  %v1770_v59 = vpop.f32.mrf.mxu0 }
  0xea   : > { %v623_v54 = vmul.f32 0.2, %v533_v43  ;;  %v448_v55 = vadd.f32 %v2072_v36, %v447_v46  ;;  %v2147_v56 = vsel %vm588_vm14, %v518_v32, %v620_v42  ;;  %v689_v57 = vmul.f32 %v2081_v49, %v2142_v50 }
  0xeb   : > { %737 = vadd.xlane.f32.xlu1 %v687_v30  ;;  %vm591_vm0 = vcmp.gt.f32.partialorder %v533_v43, 0.0  ;;  %v604_v62 = vmul.f32 0.2, %v438_v48  ;;  %v453_v63 = vadd.f32 %v1767_v35, %v2072_v36  ;;  %v2152_v0 = vsel %vm573_vm15, %v443_v38, %v605_v47  ;;  %v537_v6 = vpop.f32.mrf.mxu1  ;;  %v457_v8 = vpop.f32.mrf.mxu0 }
  0xec   : > { %v691_v1 = vmul.f32 %v2081_v49, %v2147_v56  ;;  %vm572_vm1 = vcmp.gt.f32.partialorder %v438_v48, 0.0  ;;  %v606_v2 = vmul.f32 0.2, %v448_v55  ;;  %v543_v4 = vadd.f32 %v1794_v58, %v2072_v36 }
  0xed   : > { %711 = vadd.xlane.f32.xlu0 %v674_v34  ;;  %v2157_v5 = vsel %vm591_vm0, %v533_v43, %v623_v54  ;;  %v676_v7 = vmul.f32 %v2081_v49, %v2152_v0  ;;  %vm574_vm2 = vcmp.gt.f32.partialorder %v448_v55, 0.0  ;;  %v607_v10 = vmul.f32 0.2, %v453_v63  ;;  %v1773_v20 = vpop.f32.mrf.mxu0  ;;  %v1797_v32 = vpop.f32.mrf.mxu1 }
  0xee   : > { %2667 = vst [vmem:[#allocation2_spill] sm:$0xff] %v2157_v5  ;;  %v528_v11 = vadd.f32 %v2072_v36, %v527_v51  ;;  %v2162_v12 = vsel %vm572_vm1, %v438_v48, %v604_v62  ;;  %v694_v14 = vmul.f32 %v2081_v49, %v2157_v5  ;;  %vm575_vm3 = vcmp.gt.f32.partialorder %v453_v63, 0.0 }
  0xef   : > { %709 = vadd.xlane.f32.xlu1 %v673_v41  ;;  %v625_v15 = vmul.f32 0.2, %v543_v4  ;;  %v538_v16 = vadd.f32 %v2072_v36, %v537_v6  ;;  %v2167_v17 = vsel %vm574_vm2, %v448_v55, %v606_v2  ;;  %v675_v18 = vmul.f32 %v2081_v49, %v2162_v12  ;;  %v467_v30 = vpop.f32.mrf.mxu0 }
  0xf0   : > { %vm593_vm4 = vcmp.gt.f32.partialorder %v543_v4, 0.0  ;;  %v622_v21 = vmul.f32 0.2, %v528_v11  ;;  %v463_v22 = vadd.f32 %v1770_v59, %v2072_v36  ;;  %v2172_v24 = vsel %vm575_vm3, %v453_v63, %v607_v10 }
  0xf1   : > { %743 = vadd.xlane.f32.xlu0 %v690_v45  ;;  %v677_v25 = vmul.f32 %v2081_v49, %v2167_v17  ;;  %vm590_vm5 = vcmp.gt.f32.partialorder %v528_v11, 0.0  ;;  %v624_v26 = vmul.f32 0.2, %v538_v16  ;;  %v473_v27 = vadd.f32 %v1773_v20, %v2072_v36  ;;  %v547_v45 = vpop.f32.mrf.mxu1  ;;  %v1776_v46 = vpop.f32.mrf.mxu0 }
  0xf2   : > { %v2177_v28 = vsel %vm593_vm4, %v543_v4, %v625_v15  ;;  %v678_v31 = vmul.f32 %v2081_v49, %v2172_v24  ;;  %vm592_vm6 = vcmp.gt.f32.partialorder %v538_v16, 0.0  ;;  %v609_v34 = vmul.f32 0.2, %v463_v22 }
  0xf3   : > { %747 = vadd.xlane.f32.xlu1 %v692_v52  ;;  %2668 = vst [vmem:[#allocation3_spill] sm:$0xff] %v2177_v28  ;;  %v458_v35 = vadd.f32 %v2072_v36, %v457_v8  ;;  %v2182_v37 = vsel %vm590_vm5, %v528_v11, %v622_v21  ;;  %v696_v38 = vmul.f32 %v2081_v49, %v2177_v28  ;;  %vm577_vm7 = vcmp.gt.f32.partialorder %v463_v22, 0.0  ;;  %v1800_v54 = vpop.f32.mrf.mxu1  ;;  %v477_v62 = vpop.f32.mrf.mxu0 }
  0xf4   : > { %2669 = vst [vmem:[#allocation4_spill] sm:$0xff] %v2182_v37  ;;  %v611_v40 = vmul.f32 0.2, %v473_v27  ;;  %v468_v41 = vadd.f32 %v2072_v36, %v467_v30  ;;  %v2187_v42 = vsel %vm592_vm6, %v538_v16, %v624_v26  ;;  %v693_v43 = vmul.f32 %v2081_v49, %v2182_v37 }
  0xf5   : > { %741 = vadd.xlane.f32.xlu0 %v689_v57  ;;  %2670 = vst [vmem:[#allocation5_spill] sm:$0xff] %v2187_v42  ;;  %vm579_vm8 = vcmp.gt.f32.partialorder %v473_v27, 0.0  ;;  %v608_v47 = vmul.f32 0.2, %v458_v35  ;;  %v553_v48 = vadd.f32 %v1797_v32, %v2072_v36  ;;  %v2192_v51 = vsel %vm577_vm7, %v463_v22, %v609_v34  ;;  %v557_v6 = vpop.f32.mrf.mxu1 }
  0xf6   : > { %2671 = vst [vmem:[#allocation6_spill] sm:$0xff] %v2192_v51  ;;  %v695_v52 = vmul.f32 %v2081_v49, %v2187_v42  ;;  %vm576_vm9 = vcmp.gt.f32.partialorder %v458_v35, 0.0  ;;  %v610_v55 = vmul.f32 0.2, %v468_v41  ;;  %v548_v57 = vadd.f32 %v2072_v36, %v547_v45 }
  0xf7   : > { %745 = vadd.xlane.f32.xlu1 %v691_v1  ;;  %v2197_v58 = vsel %vm579_vm8, %v473_v27, %v611_v40  ;;  %v680_v59 = vmul.f32 %v2081_v49, %v2192_v51  ;;  %vm578_vm10 = vcmp.gt.f32.partialorder %v468_v41, 0.0  ;;  %v627_v63 = vmul.f32 0.2, %v553_v48 }
  0xf8   : > { %2672 = vst [vmem:[#allocation7_spill] sm:$0xff] %v2197_v58  ;;  %v483_v1 = vadd.f32 %v1776_v46, %v2072_v36  ;;  %v2202_v2 = vsel %vm576_vm9, %v458_v35, %v608_v47  ;;  %v682_v4 = vmul.f32 %v2081_v49, %v2197_v58  ;;  %vm595_vm11 = vcmp.gt.f32.partialorder %v553_v48, 0.0 }
  0xf9   : > { %715 = vadd.xlane.f32.xlu0 %v676_v7  ;;  %v626_v7 = vmul.f32 0.2, %v548_v57  ;;  %v478_v8 = vadd.f32 %v2072_v36, %v477_v62  ;;  %v2207_v10 = vsel %vm578_vm10, %v468_v41, %v610_v55  ;;  %v679_v11 = vmul.f32 %v2081_v49, %v2202_v2 }
  0xfa   : > { %2673 = vst [vmem:[#allocation8_spill] sm:$0xff] %v2207_v10  ;;  %vm594_vm12 = vcmp.gt.f32.partialorder %v548_v57, 0.0  ;;  %v558_v15 = vadd.f32 %v2072_v36, %v557_v6  ;;  %v2212_v16 = vsel %vm595_vm11, %v553_v48, %v627_v63  ;;  %vm581_vm13 = vcmp.gt.f32.partialorder %v483_v1, 0.0 }
  0xfb   : > { %751 = vadd.xlane.f32.xlu1 %v694_v14  ;;  %v613_v14 = vmul.f32 0.2, %v483_v1  ;;  %2674 = vst [vmem:[#allocation9_spill] sm:$0xff] %v2212_v16  ;;  %v612_v20 = vmul.f32 0.2, %v478_v8  ;;  %v563_v21 = vadd.f32 %v1800_v54, %v2072_v36  ;;  %v2217_v22 = vsel %vm594_vm12, %v548_v57, %v626_v7 }
  0xfc   : > { %2675 = vst [vmem:[#allocation10_spill] sm:$0xff] %v2217_v22  ;;  %vm580_vm14 = vcmp.gt.f32.partialorder %v478_v8, 0.0  ;;  %v628_v26 = vmul.f32 0.2, %v558_v15  ;;  %v697_v30 = vmul.f32 %v2081_v49, %v2217_v22  ;;  %vm596_vm15 = vcmp.gt.f32.partialorder %v558_v15, 0.0 }
  0xfd   : > { %713 = vadd.xlane.f32.xlu0 %v675_v18  ;;  %v681_v18 = vmul.f32 %v2081_v49, %v2207_v10  ;;  %v2221_v27 = vsel %vm581_vm13, %v483_v1, %v613_v14  ;;  %v2225_v32 = vsel %vm580_vm14, %v478_v8, %v612_v20  ;;  %vm597_vm0 = vcmp.gt.f32.partialorder %v563_v21, 0.0 }
  0xfe   : > { %2676 = vst [vmem:[#allocation11_spill] sm:$0xff] %v2221_v27  ;;  %2677 = vst [vmem:[#allocation12_spill] sm:$0xff] %v2225_v32  ;;  %v684_v36 = vmul.f32 %v2081_v49, %v2221_v27  ;;  %v2229_v34 = vsel %vm596_vm15, %v558_v15, %v628_v26  ;;  %v683_v35 = vmul.f32 %v2081_v49, %v2225_v32  ;;  %vm1565_vm1 = vcmask 1041409  }
  0xff   : > { %717 = vadd.xlane.f32.xlu1 %v677_v25  ;;  %v698_v25 = vmul.f32 %v2081_v49, %v2212_v16  ;;  %2678 = vst [vmem:[#allocation13_spill] sm:$0xff] %v2229_v34  ;;  %v699_v40 = vmul.f32 %v2081_v49, %v2229_v34  ;;  %vm1567_vm2 = vcmask 1042434   ;;  %vm1569_vm3 = vcmask 1043459  }
 0x100   : > { %vm1571_vm4 = vcmask 1044484   ;;  %vm1573_vm5 = vcmask 1045509   ;;  %vm1575_vm6 = vcmask 1046534   ;;  %vm1577_vm7 = vcmask 1047559  }
 0x101   : > { %719 = vadd.xlane.f32.xlu0 %v678_v31  ;;  %v629_v31 = vmul.f32 0.2, %v563_v21 }
 0x103   : > { %755 = vadd.xlane.f32.xlu1 %v696_v38  ;;  %v2233_v38 = vsel %vm597_vm0, %v563_v21, %v629_v31 }
 0x104   : > { %2679 = vst [vmem:[#allocation14_spill] sm:$0xff] %v2233_v38  ;;  %v700_v41 = vmul.f32 %v2081_v49, %v2233_v38 }
 0x105   : > { %749 = vadd.xlane.f32.xlu0 %v693_v43 }
 0x107   : > { %753 = vadd.xlane.f32.xlu1 %v695_v52 }
 0x109   : > { %723 = vadd.xlane.f32.xlu0 %v680_v59 }
 0x10b   : > { %727 = vadd.xlane.f32.xlu1 %v682_v4 }
 0x10d   : > { %721 = vadd.xlane.f32.xlu0 %v679_v11 }
 0x10f   : > { %725 = vadd.xlane.f32.xlu1 %v681_v18 }
 0x111   : > { %759 = vadd.xlane.f32.xlu0 %v698_v25 }
 0x113   : > { %757 = vadd.xlane.f32.xlu1 %v697_v30 }
 0x115   : > { %731 = vadd.xlane.f32.xlu0 %v684_v36 }
 0x117   : > { %729 = vadd.xlane.f32.xlu1 %v683_v35 }
 0x119   : > { %761 = vadd.xlane.f32.xlu0 %v699_v40 }
 0x11b   : > { %763 = vadd.xlane.f32.xlu1 %v700_v41 }
 0x166   : > { %v2239_v43 = vpop.xlane.xlu0 %703 }
 0x167   : > { %v771_v55 = vrot.slane %v2239_v43, 4 }
 0x168   : > { %v734_v45 = vpop.xlane.xlu1 %733 }
 0x169   : > { %v861_v46 = vrot.slane %v734_v45, 4  ;;  %v772_v49 = vmax.f32 %v2239_v43, %v771_v55 }
 0x16a   : > { %v736_v47 = vpop.xlane.xlu0 %735 }
 0x16b   : > { %v862_v48 = vmax.f32 %v734_v45, %v861_v46  ;;  %v867_v52 = vrot.slane %v736_v47, 4  ;;  %v773_v21 = vrot.slane %v772_v49, 2 }
 0x16c   : > { %v2241_v54 = vpop.xlane.xlu1 %707 }
 0x16d   : > { %v863_v57 = vrot.slane %v862_v48, 2  ;;  %v868_v59 = vmax.f32 %v736_v47, %v867_v52  ;;  %v783_v15 = vrot.slane %v2241_v54, 4  ;;  %v774_v55 = vmax.f32 %v772_v49, %v773_v21 }
 0x16e   : > { %v2244_v62 = vpop.xlane.xlu0 %701 }
 0x16f   : > { %v864_v63 = vmax.f32 %v862_v48, %v863_v57  ;;  %v869_v1 = vrot.slane %v868_v59, 2  ;;  %v765_v30 = vrot.slane %v2244_v62, 4  ;;  %v784_v46 = vmax.f32 %v2241_v54, %v783_v15 }
 0x170   : > { %v2246_v4 = vpop.xlane.xlu1 %705 }
 0x171   : > { %v865_v6 = vrot.slane %v864_v63, 1  ;;  %v870_v7 = vmax.f32 %v868_v59, %v869_v1  ;;  %v766_v59 = vmax.f32 %v2244_v62, %v765_v30 }
 0x172   : > { %v740_v8 = vpop.xlane.xlu0 %739 }
 0x173   : > { %v866_v11 = vmax.f32 %v864_v63, %v865_v6  ;;  %v871_v14 = vrot.slane %v870_v7, 1  ;;  %v879_v18 = vrot.slane %v740_v8, 4  ;;  %v777_v6 = vrot.slane %v2246_v4, 4 }
 0x174   : > { %v738_v20 = vpop.xlane.xlu1 %737 }
 0x175   : > { %v973_v25 = vsub.f32 %v734_v45, %v866_v11  ;;  %v872_v26 = vmax.f32 %v870_v7, %v871_v14  ;;  %v880_v31 = vmax.f32 %v740_v8, %v879_v18  ;;  %v873_v36 = vrot.slane %v738_v20, 4 }
 0x176   : > { %v2251_v35 = vpop.xlane.xlu0 %711  ;;  %v785_v7 = vrot.slane %v784_v46, 2  ;;  %v775_v18 = vrot.slane %v774_v55, 1  ;;  %v778_v49 = vmax.f32 %v2246_v4, %v777_v6 }
 0x177   : > { %v1021_v40 = vmul.f32 1.442695, %v973_v25  ;;  %v974_v41 = vsub.f32 %v736_v47, %v872_v26  ;;  %v881_v48 = vrot.slane %v880_v31, 2  ;;  %v874_v52 = vmax.f32 %v738_v20, %v873_v36 }
 0x178   : > { %v767_v25 = vrot.slane %v766_v59, 2  ;;  %v779_v16 = vrot.slane %v778_v49, 2  ;;  %v2258_v6 = vpop.xlane.xlu1 %709 }
 0x179   : > { %1817 = vpow2.f32 %v1021_v40  ;;  %v1023_v57 = vmul.f32 1.442695, %v974_v41  ;;  %v882_v63 = vmax.f32 %v880_v31, %v881_v48  ;;  %v875_v45 = vrot.slane %v874_v52, 2 }
 0x17a   : > { %v744_v1 = vpop.xlane.xlu0 %743  ;;  %v786_v40 = vmax.f32 %v784_v46, %v785_v7  ;;  %v776_v41 = vmax.f32 %v774_v55, %v775_v18  ;;  %v795_v7 = vrot.slane %v2251_v35, 4 }
 0x17b   : > { %1819 = vpow2.f32 %v1023_v57  ;;  %v883_v11 = vrot.slane %v882_v63, 1  ;;  %v876_v14 = vmax.f32 %v874_v52, %v875_v45  ;;  %v891_v47 = vrot.slane %v744_v1, 4 }
 0x17c   : > { %v768_v57 = vmax.f32 %v766_v59, %v767_v25  ;;  %v787_v45 = vrot.slane %v786_v40, 1 }
 0x17d   : > { %v884_v15 = vmax.f32 %v882_v63, %v883_v11  ;;  %v877_v26 = vrot.slane %v876_v14, 1  ;;  %v892_v21 = vmax.f32 %v744_v1, %v891_v47  ;;  %v958_v11 = vsub.f32 %v2239_v43, %v776_v41 }
 0x17e   : > { %v742_v36 = vpop.xlane.xlu0 %741 }
 0x17f   : > { %v976_v30 = vsub.f32 %v740_v8, %v884_v15  ;;  %v878_v31 = vmax.f32 %v876_v14, %v877_v26  ;;  %v893_v48 = vrot.slane %v892_v21, 2  ;;  %v885_v32 = vrot.slane %v742_v36, 4 }
 0x180   : > { %v769_v8 = vrot.slane %v768_v57, 1  ;;  %v991_v18 = vmul.f32 1.442695, %v958_v11 }
 0x181   : > { %v1027_v38 = vmul.f32 1.442695, %v976_v30  ;;  %v975_v34 = vsub.f32 %v738_v20, %v878_v31  ;;  %v894_v52 = vmax.f32 %v892_v21, %v893_v48  ;;  %v886_v63 = vmax.f32 %v742_v36, %v885_v32 }
 0x182   : > { %v780_v20 = vmax.f32 %v778_v49, %v779_v16  ;;  %v789_v32 = vrot.slane %v2258_v6, 4  ;;  %v770_v26 = vmax.f32 %v768_v57, %v769_v8  ;;  %v796_v31 = vmax.f32 %v2251_v35, %v795_v7 }
 0x183   : > { %1821 = vpow2.f32 %v1027_v38  ;;  %v1025_v27 = vmul.f32 1.442695, %v975_v34  ;;  %v895_v47 = vrot.slane %v894_v52, 1  ;;  %v887_v55 = vrot.slane %v886_v63, 2 }
 0x184   : > { %v788_v38 = vmax.f32 %v786_v40, %v787_v45  ;;  %v781_v49 = vrot.slane %v780_v20, 1  ;;  %v790_v41 = vmax.f32 %v2258_v6, %v789_v32  ;;  %v957_v11 = vsub.f32 %v2244_v62, %v770_v26 }
 0x185   : > { %1823 = vpow2.f32 %v1025_v27  ;;  %v896_v34 = vmax.f32 %v894_v52, %v895_v47  ;;  %v888_v43 = vmax.f32 %v886_v63, %v887_v55  ;;  %v797_v55 = vrot.slane %v796_v31, 2 }
 0x186   : > { %v2260_v46 = vpop.eup %1817  ;;  %v960_v40 = vsub.f32 %v2241_v54, %v788_v38  ;;  %1825 = vpow2.f32 %v991_v18  ;;  %v782_v8 = vmax.f32 %v780_v20, %v781_v49  ;;  %v989_v32 = vmul.f32 1.442695, %v957_v11 }
 0x187   : > { %v1149_v59 = vrot.slane %v2260_v46, 4  ;;  %v978_v27 = vsub.f32 %v744_v1, %v896_v34  ;;  %v889_v21 = vrot.slane %v888_v43, 1  ;;  %v791_v34 = vrot.slane %v790_v41, 2 }
 0x188   : > { %v2264_v14 = vpop.eup %1819 }
 0x189   : > { %v1150_v25 = vadd.f32 %v2260_v46, %v1149_v59  ;;  %v1155_v15 = vrot.slane %v2264_v14, 4  ;;  %v1031_v48 = vmul.f32 1.442695, %v978_v27  ;;  %v890_v52 = vmax.f32 %v888_v43, %v889_v21 }
 0x18a   : > { %v995_v59 = vmul.f32 1.442695, %v960_v40  ;;  %v792_v27 = vmax.f32 %v790_v41, %v791_v34 }
 0x18b   : > { %v1151_v30 = vrot.slane %v1150_v25, 2  ;;  %v1156_v16 = vadd.f32 %v2264_v14, %v1155_v15  ;;  %1827 = vpow2.f32 %v1031_v48  ;;  %v977_v1 = vsub.f32 %v742_v36, %v890_v52 }
 0x18c   : > { %v959_v36 = vsub.f32 %v2246_v4, %v782_v8 }
 0x18d   : > { %v1152_v45 = vadd.f32 %v1151_v30, %v1150_v25  ;;  %v1157_v63 = vrot.slane %v1156_v16, 2  ;;  %v1029_v7 = vmul.f32 1.442695, %v977_v1  ;;  %v798_v25 = vmax.f32 %v796_v31, %v797_v55 }
 0x18e   : > { %v993_v49 = vmul.f32 1.442695, %v959_v36 }
 0x18f   : > { %v1153_v57 = vrot.slane %v1152_v45, 1  ;;  %v1158_v47 = vadd.f32 %v1157_v63, %v1156_v16  ;;  %1829 = vpow2.f32 %v1029_v7  ;;  %v2283_v16 = vpop.xlane.xlu0 %715  ;;  %v799_v40 = vrot.slane %v798_v25, 1 }
 0x190   : > { %v2274_v15 = vpop.eup %1821  ;;  %v807_v4 = vrot.slane %v2283_v16, 4 }
 0x191   : > { %v1154_v54 = vadd.f32 %v1153_v57, %v1152_v45  ;;  %v1159_v38 = vrot.slane %v1158_v47, 1  ;;  %v1167_v43 = vrot.slane %v2274_v15, 4  ;;  %v793_v45 = vrot.slane %v792_v27, 1 }
 0x192   : > { %v2277_v18 = vpop.eup %1823  ;;  %v800_v41 = vmax.f32 %v798_v25, %v799_v40  ;;  %v808_v7 = vmax.f32 %v2283_v16, %v807_v4 }
 0x193   : > { %1831 = vrcp.f32 %v1154_v54  ;;  %v1160_v62 = vadd.f32 %v1159_v38, %v1158_v47  ;;  %v1168_v20 = vadd.f32 %v2274_v15, %v1167_v43  ;;  %v1161_v26 = vrot.slane %v2277_v18, 4  ;;  %v2286_v31 = vpop.eup %1825 }
 0x194   : > { %1833 = vpow2.f32 %v995_v59  ;;  %v794_v8 = vmax.f32 %v792_v27, %v793_v45  ;;  %v2291_v59 = vpop.xlane.xlu1 %747  ;;  %v1059_v34 = vrot.slane %v2286_v31, 4  ;;  %v962_v43 = vsub.f32 %v2251_v35, %v800_v41 }
 0x195   : > { %1835 = vrcp.f32 %v1160_v62  ;;  %v1169_v21 = vrot.slane %v1168_v20, 2  ;;  %v1162_v30 = vadd.f32 %v2277_v18, %v1161_v26  ;;  %v903_v62 = vrot.slane %v2291_v59, 4 }
 0x196   : > { %1837 = vpow2.f32 %v989_v32  ;;  %v961_v25 = vsub.f32 %v2258_v6, %v794_v8  ;;  %v999_v4 = vmul.f32 1.442695, %v962_v43 }
 0x197   : > { %v1170_v48 = vadd.f32 %v1169_v21, %v1168_v20  ;;  %v1163_v52 = vrot.slane %v1162_v30, 2  ;;  %1839 = vpow2.f32 %v993_v49  ;;  %v1060_v21 = vadd.f32 %v2286_v31, %v1059_v34 }
 0x198   : > { %v2288_v1 = vpop.eup %1827  ;;  %v809_v49 = vrot.slane %v808_v7, 2  ;;  %v904_v41 = vmax.f32 %v2291_v59, %v903_v62 }
 0x199   : > { %v1171_v63 = vrot.slane %v1170_v48, 1  ;;  %v1164_v11 = vadd.f32 %v1163_v52, %v1162_v30  ;;  %v1179_v55 = vrot.slane %v2288_v1, 4 }
 0x19b   : > { %v1172_v57 = vadd.f32 %v1171_v63, %v1170_v48  ;;  %v1165_v47 = vrot.slane %v1164_v11, 1  ;;  %v1180_v38 = vadd.f32 %v2288_v1, %v1179_v55  ;;  %v997_v63 = vmul.f32 1.442695, %v961_v25 }
 0x19c   : > { %v2296_v32 = vpop.eup %1829  ;;  %v810_v55 = vmax.f32 %v808_v7, %v809_v49 }
 0x19d   : > { %1841 = vrcp.f32 %v1172_v57  ;;  %v1166_v54 = vadd.f32 %v1165_v47, %v1164_v11  ;;  %v1181_v20 = vrot.slane %v1180_v38, 2  ;;  %v1173_v26 = vrot.slane %v2296_v32, 4 }
 0x19e   : > { %v1061_v47 = vrot.slane %v1060_v21, 2 }
 0x19f   : > { %1843 = vrcp.f32 %v1166_v54  ;;  %v1182_v48 = vadd.f32 %v1181_v20, %v1180_v38  ;;  %v1174_v35 = vadd.f32 %v2296_v32, %v1173_v26  ;;  %v905_v26 = vrot.slane %v904_v41, 2 }
 0x1a0   : > { %v1832_v36 = vpop.eup %1831  ;;  %1845 = vpow2.f32 %v999_v4 }
 0x1a1   : > { %v2302_v27 = vpop.eup %1833  ;;  %v1293_v30 = vmul.f32 %v1832_v36, %v2260_v46  ;;  %v1183_v11 = vrot.slane %v1182_v48, 1  ;;  %v1175_v57 = vrot.slane %v1174_v35, 2  ;;  %1847 = vpow2.f32 %v997_v63 }
 0x1a2   : > { %v1836_v40 = vpop.eup %1835  ;;  %v1071_v34 = vrot.slane %v2302_v27, 4 }
 0x1a3   : > { %v2307_v52 = vpop.eup %1837  ;;  %v1325_v45 = vmul.f32 %v1293_v30, %v2090_v60  ;;  %v1294_v6 = vmul.f32 %v1836_v40, %v2264_v14  ;;  %v1184_v38 = vadd.f32 %v1183_v11, %v1182_v48  ;;  %v1176_v36 = vadd.f32 %v1175_v57, %v1174_v35 }
 0x1a4   : > { %v1053_v54 = vrot.slane %v2307_v52, 4  ;;  %v2315_v14 = vpop.eup %1839  ;;  %v811_v30 = vrot.slane %v810_v55, 1  ;;  %v1062_v40 = vadd.f32 %v1061_v47, %v1060_v21 }
 0x1a5   : > { %v1437_v8 = vrot.slane %v1325_v45, 4  ;;  %v1326_v46 = vmul.f32 %v1294_v6, %v2092_v61  ;;  %v1177_v43 = vrot.slane %v1176_v36, 1  ;;  %v1072_v61 = vadd.f32 %v2302_v27, %v1071_v34 }
 0x1a6   : > { %v1054_v7 = vadd.f32 %v2307_v52, %v1053_v54  ;;  %1849 = vrcp.f32 %v1184_v38 }
 0x1a7   : > { %v1438_v60 = vadd.f32 %v1437_v8, %v1325_v45  ;;  %v1443_v20 = vrot.slane %v1326_v46, 4  ;;  %v1065_v45 = vrot.slane %v2315_v14, 4  ;;  %v1178_v6 = vadd.f32 %v1177_v43, %v1176_v36 }
 0x1a8   : > { %v906_v8 = vmax.f32 %v904_v41, %v905_v26  ;;  %v1055_v21 = vrot.slane %v1054_v7, 2  ;;  %v1073_v38 = vrot.slane %v1072_v61, 2 }
 0x1a9   : > { %v1439_v62 = vrot.slane %v1438_v60, 2  ;;  %v1444_v25 = vadd.f32 %v1443_v20, %v1326_v46  ;;  %v812_v46 = vmax.f32 %v810_v55, %v811_v30  ;;  %v1063_v20 = vrot.slane %v1062_v40, 1 }
 0x1aa   : > { %v1842_v49 = vpop.eup %1841  ;;  %1851 = vrcp.f32 %v1178_v6  ;;  %v1056_v26 = vadd.f32 %v1055_v21, %v1054_v7 }
 0x1ab   : > { %v1440_v48 = vadd.f32 %v1439_v62, %v1438_v60  ;;  %v1445_v35 = vrot.slane %v1444_v25, 2  ;;  %v1296_v4 = vmul.f32 %v1842_v49, %v2274_v15  ;;  %v1066_v60 = vadd.f32 %v2315_v14, %v1065_v45  ;;  %v2326_v49 = vpop.xlane.xlu1 %745 }
 0x1ac   : > { %v1844_v63 = vpop.eup %1843  ;;  %v964_v41 = vsub.f32 %v2283_v16, %v812_v46  ;;  %v1064_v55 = vadd.f32 %v1063_v20, %v1062_v40  ;;  %v1057_v40 = vrot.slane %v1056_v26, 1 }
 0x1ad   : > { %v1441_v11 = vrot.slane %v1440_v48, 1  ;;  %v1446_v57 = vadd.f32 %v1445_v35, %v1444_v25  ;;  %v1328_v47 = vmul.f32 %v1296_v4, %v2112_v19  ;;  %v1295_v34 = vmul.f32 %v1844_v63, %v2277_v18  ;;  %v2329_v6 = vpop.eup %1845 }
 0x1ae   : > { %v907_v25 = vrot.slane %v906_v8, 1  ;;  %v1074_v35 = vadd.f32 %v1073_v38, %v1072_v61  ;;  %v1067_v45 = vrot.slane %v1066_v60, 2  ;;  %v1003_v16 = vmul.f32 1.442695, %v964_v41 }
 0x1af   : > { %v1447_v54 = vrot.slane %v1446_v57, 1  ;;  %v1455_v36 = vrot.slane %v1328_v47, 4  ;;  %v1327_v15 = vmul.f32 %v1295_v34, %v2117_v23  ;;  %v1442_v43 = vadd.f32 %v1441_v11, %v1440_v48  ;;  %v2331_v23 = vpop.eup %1847 }
 0x1b0   : > { %v908_v48 = vmax.f32 %v906_v8, %v907_v25  ;;  %v897_v11 = vrot.slane %v2326_v49, 4  ;;  %1853 = vrcp.f32 %v1064_v55  ;;  %v1075_v20 = vrot.slane %v1074_v35, 1  ;;  %v2342_v55 = vpop.xlane.xlu1 %751 }
 0x1b1   : > { %v1448_v62 = vadd.f32 %v1447_v54, %v1446_v57  ;;  %v1456_v30 = vadd.f32 %v1455_v36, %v1328_v47  ;;  %v1449_v19 = vrot.slane %v1327_v15, 4  ;;  %v1068_v21 = vadd.f32 %v1067_v45, %v1066_v60 }
 0x1b2   : > { %1855 = vpow2.f32 %v1003_v16  ;;  %v1083_v47 = vrot.slane %v2329_v6, 4  ;;  %v1077_v34 = vrot.slane %v2331_v23, 4  ;;  %v1058_v8 = vadd.f32 %v1057_v40, %v1056_v26 }
 0x1b3   : > { %v1586_v18 = vsel %vm1565_vm1, %v1448_v62, %v1442_v43  ;;  %v1457_v4 = vrot.slane %v1456_v30, 2  ;;  %v1450_v63 = vadd.f32 %v1449_v19, %v1327_v15  ;;  %v1850_v46 = vpop.eup %1849  ;;  %v980_v15 = vsub.f32 %v2291_v59, %v908_v48  ;;  %v2339_v62 = vpop.xlane.xlu0 %713 }
 0x1b4   : > { %v1298_v38 = vmul.f32 %v1850_v46, %v2288_v1  ;;  %v898_v43 = vmax.f32 %v2326_v49, %v897_v11  ;;  %v1076_v25 = vadd.f32 %v1075_v20, %v1074_v35  ;;  %v1069_v41 = vrot.slane %v1068_v21, 1 }
 0x1b5   : > { %v1458_v7 = vadd.f32 %v1457_v4, %v1456_v30  ;;  %v1451_v57 = vrot.slane %v1450_v63, 2  ;;  %v1084_v45 = vadd.f32 %v2329_v6, %v1083_v47  ;;  %v1078_v1 = vadd.f32 %v2331_v23, %v1077_v34 }
 0x1b6   : > { %v1330_v60 = vmul.f32 %v1298_v38, %v2132_v39  ;;  %1857 = vrcp.f32 %v1058_v8  ;;  %v899_v48 = vrot.slane %v898_v43, 2  ;;  %v1070_v39 = vadd.f32 %v1069_v41, %v1068_v21 }
 0x1b7   : > { %v1452_v61 = vadd.f32 %v1451_v57, %v1450_v63  ;;  %v1459_v54 = vrot.slane %v1458_v7, 1  ;;  %v1852_v30 = vpop.eup %1851  ;;  %v1035_v63 = vmul.f32 1.442695, %v980_v15  ;;  %1859 = vrcp.f32 %v1076_v25  ;;  %v2351_v20 = vpop.xlane.xlu0 %719 }
 0x1b8   : > { %v1467_v59 = vrot.slane %v1330_v60, 4  ;;  %v1297_v4 = vmul.f32 %v1852_v30, %v2296_v32  ;;  %v1085_v40 = vrot.slane %v1084_v45, 2  ;;  %v1079_v57 = vrot.slane %v1078_v1, 2  ;;  %v2353_v32 = vpop.xlane.xlu1 %717 }
 0x1b9   : > { %v1453_v36 = vrot.slane %v1452_v61, 1  ;;  %v1460_v26 = vadd.f32 %v1459_v54, %v1458_v7  ;;  %v801_v7 = vrot.slane %v2339_v62, 4  ;;  %1861 = vpow2.f32 %v1035_v63 }
 0x1ba   : > { %v1468_v11 = vadd.f32 %v1467_v59, %v1330_v60  ;;  %v1329_v46 = vmul.f32 %v1297_v4, %v2142_v50  ;;  %v900_v47 = vmax.f32 %v898_v43, %v899_v48  ;;  %1863 = vrcp.f32 %v1070_v39 }
 0x1bb   : > { %v1454_v19 = vadd.f32 %v1453_v36, %v1452_v61  ;;  %v802_v34 = vmax.f32 %v2339_v62, %v801_v7  ;;  %v1086_v38 = vadd.f32 %v1085_v40, %v1084_v45  ;;  %v1080_v8 = vadd.f32 %v1079_v57, %v1078_v1 }
 0x1bc   : > { %v1469_v61 = vrot.slane %v1468_v11, 2  ;;  %v901_v60 = vrot.slane %v900_v47, 1 }
 0x1bd   : > { %v1587_v35 = vsel %vm1567_vm2, %v1454_v19, %v1586_v18  ;;  %v1461_v18 = vrot.slane %v1329_v46, 4  ;;  %v1854_v21 = vpop.eup %1853  ;;  %v803_v50 = vrot.slane %v802_v34, 2  ;;  %v2359_v19 = vpop.xlane.xlu0 %749  ;;  %v1087_v59 = vrot.slane %v1086_v38, 1 }
 0x1be   : > { %v1588_v16 = vsel %vm1569_vm3, %v1460_v26, %v1587_v35  ;;  %v1470_v15 = vadd.f32 %v1469_v61, %v1468_v11  ;;  %v1278_v43 = vmul.f32 %v1854_v21, %v2286_v31  ;;  %v2362_v26 = vpop.xlane.xlu1 %755  ;;  %v1081_v4 = vrot.slane %v1080_v8, 1 }
 0x1bf   : > { %v2356_v54 = vpop.eup %1855  ;;  %v1462_v36 = vadd.f32 %v1461_v18, %v1329_v46  ;;  %v804_v30 = vmax.f32 %v802_v34, %v803_v50  ;;  %v902_v39 = vmax.f32 %v900_v47, %v901_v60  ;;  %v813_v46 = vrot.slane %v2353_v32, 4 }
 0x1c0   : > { %v1095_v25 = vrot.slane %v2356_v54, 4  ;;  %v1471_v63 = vrot.slane %v1470_v15, 1  ;;  %v1310_v40 = vmul.f32 %v1278_v43, %v2084_v53  ;;  %v1088_v31 = vadd.f32 %v1087_v59, %v1086_v38 }
 0x1c1   : > { %v1463_v41 = vrot.slane %v1462_v36, 2  ;;  %v805_v1 = vrot.slane %v804_v30, 1  ;;  %v1082_v61 = vadd.f32 %v1081_v4, %v1080_v8  ;;  %v915_v34 = vrot.slane %v2342_v55, 4  ;;  %v2368_v21 = vpop.xlane.xlu0 %723 }
 0x1c2   : > { %v1096_v45 = vadd.f32 %v2356_v54, %v1095_v25  ;;  %v819_v47 = vrot.slane %v2351_v20, 4  ;;  %v979_v38 = vsub.f32 %v2326_v49, %v902_v39  ;;  %1865 = vrcp.f32 %v1088_v31 }
 0x1c3   : > { %v1464_v35 = vadd.f32 %v1463_v41, %v1462_v36  ;;  %v1858_v11 = vpop.eup %1857  ;;  %v806_v57 = vmax.f32 %v804_v30, %v805_v1  ;;  %v1472_v36 = vadd.f32 %v1471_v63, %v1470_v15  ;;  %v2372_v41 = vpop.xlane.xlu1 %753  ;;  %v1347_v30 = vrot.slane %v1310_v40, 4 }
 0x1c4   : > { %v1860_v7 = vpop.eup %1859  ;;  %v1097_v50 = vrot.slane %v1096_v45, 2  ;;  %v1277_v53 = vmul.f32 %v1858_v11, %v2307_v52  ;;  %1867 = vrcp.f32 %v1082_v61  ;;  %v1033_v63 = vmul.f32 1.442695, %v979_v38 }
 0x1c5   : > { %v1465_v48 = vrot.slane %v1464_v35, 1  ;;  %v963_v25 = vsub.f32 %v2339_v62, %v806_v57  ;;  %v814_v62 = vmax.f32 %v2353_v32, %v813_v46  ;;  %v1280_v4 = vmul.f32 %v1860_v7, %v2302_v27  ;;  %v2387_v1 = vpop.xlane.xlu0 %721 }
 0x1c6   : > { %v2377_v8 = vpop.eup %1861  ;;  %v1098_v52 = vadd.f32 %v1097_v50, %v1096_v45  ;;  %v1309_v49 = vmul.f32 %v1277_v53, %v2102_v9  ;;  %v831_v46 = vrot.slane %v2368_v21, 4  ;;  %v825_v9 = vrot.slane %v2387_v1, 4 }
 0x1c7   : > { %v1466_v18 = vadd.f32 %v1465_v48, %v1464_v35  ;;  %v1001_v15 = vmul.f32 1.442695, %v963_v25  ;;  %v1864_v59 = vpop.eup %1863  ;;  %v820_v35 = vmax.f32 %v2351_v20, %v819_v47  ;;  %v1348_v48 = vadd.f32 %v1347_v30, %v1310_v40  ;;  %v2389_v11 = vpop.xlane.xlu1 %727 }
 0x1c8   : > { %v815_v39 = vrot.slane %v814_v62, 2  ;;  %v1312_v57 = vmul.f32 %v1280_v4, %v2097_v3  ;;  %v1279_v27 = vmul.f32 %v1864_v59, %v2315_v14  ;;  %v1191_v45 = vrot.slane %v2377_v8, 4 }
 0x1c9   : > { %v1589_v60 = vsel %vm1571_vm4, %v1466_v18, %v1588_v16  ;;  %v916_v16 = vmax.f32 %v2342_v55, %v915_v34  ;;  %1869 = vpow2.f32 %v1001_v15  ;;  %v1099_v7 = vrot.slane %v1098_v52, 1  ;;  %v2425_v10 = vpop.xlane.xlu0 %759 }
 0x1ca   : > { %v2380_v43 = vsel %vm1573_vm5, %v1472_v36, %v1589_v60  ;;  %v821_v61 = vrot.slane %v820_v35, 2  ;;  %v1341_v18 = vrot.slane %v1309_v49, 4  ;;  %1871 = vpow2.f32 %v1033_v63 }
 0x1cb   : > { %2680 = vst [vmem:[#allocation15_spill] sm:$0xff] %v2380_v43  ;;  %v917_v31 = vrot.slane %v916_v16, 2  ;;  %v909_v40 = vrot.slane %v2359_v19, 4  ;;  %v1349_v34 = vrot.slane %v1348_v48, 2  ;;  %v816_v36 = vmax.f32 %v814_v62, %v815_v39  ;;  %v2405_v59 = vpop.xlane.xlu1 %725 }
 0x1cc   : > { %v927_v50 = vrot.slane %v2362_v26, 4  ;;  %v921_v3 = vrot.slane %v2372_v41, 4  ;;  %v1311_v14 = vmul.f32 %v1279_v27, %v2107_v13  ;;  %v2401_v25 = vadd.f32 %v2377_v8, %v1191_v45 }
 0x1cd   : > { %v832_v47 = vmax.f32 %v2368_v21, %v831_v46  ;;  %v826_v53 = vmax.f32 %v2387_v1, %v825_v9  ;;  %v1359_v60 = vrot.slane %v1312_v57, 4  ;;  %v1100_v38 = vadd.f32 %v1099_v7, %v1098_v52 }
 0x1ce   : > { %v918_v30 = vmax.f32 %v916_v16, %v917_v31  ;;  %v822_v15 = vmax.f32 %v820_v35, %v821_v61  ;;  %v1342_v62 = vadd.f32 %v1341_v18, %v1309_v49  ;;  %v910_v4 = vmax.f32 %v2359_v19, %v909_v40 }
 0x1cf   : > { %v843_v63 = vrot.slane %v2389_v11, 4  ;;  %v827_v39 = vrot.slane %v826_v53, 2  ;;  %v2409_v13 = vadd.f32 %v1349_v34, %v1348_v48  ;;  %v817_v27 = vrot.slane %v816_v36, 1  ;;  %v1866_v35 = vpop.eup %1865  ;;  %v2428_v5 = vpop.xlane.xlu1 %757 }
 0x1d0   : > { %v928_v45 = vmax.f32 %v2362_v26, %v927_v50  ;;  %v922_v46 = vmax.f32 %v2372_v41, %v921_v3  ;;  %v1353_v9 = vrot.slane %v1311_v14, 4  ;;  %v833_v43 = vrot.slane %v832_v47, 2 }
 0x1d1   : > { %v828_v52 = vmax.f32 %v826_v53, %v827_v39  ;;  %v837_v16 = vrot.slane %v2405_v59, 4  ;;  %v2414_v7 = vadd.f32 %v1359_v60, %v1312_v57  ;;  %1873 = vrcp.f32 %v1100_v38  ;;  %v1868_v61 = vpop.eup %1867 }
 0x1d2   : > { %v919_v49 = vrot.slane %v918_v30, 1  ;;  %v823_v31 = vrot.slane %v822_v15, 1  ;;  %v1343_v18 = vrot.slane %v1342_v62, 2  ;;  %v911_v48 = vrot.slane %v910_v4, 2 }
 0x1d3   : > { %v844_v40 = vmax.f32 %v2389_v11, %v843_v63  ;;  %v838_v34 = vmax.f32 %v2405_v59, %v837_v16  ;;  %v818_v3 = vmax.f32 %v816_v36, %v817_v27  ;;  %v929_v22 = vrot.slane %v928_v45, 2 }
 0x1d4   : > { %v923_v53 = vrot.slane %v922_v46, 2  ;;  %v829_v39 = vrot.slane %v828_v52, 1  ;;  %v2420_v28 = vadd.f32 %v1353_v9, %v1311_v14  ;;  %v834_v60 = vmax.f32 %v832_v47, %v833_v43 }
 0x1d5   : > { %v839_v38 = vrot.slane %v838_v34, 2  ;;  %v1282_v58 = vmul.f32 %v1866_v35, %v2329_v6  ;;  %v1281_v42 = vmul.f32 %v1868_v61, %v2331_v23  ;;  %v920_v37 = vmax.f32 %v918_v30, %v919_v49 }
 0x1d6   : > { %v2418_v50 = vpop.eup %1869  ;;  %v824_v63 = vmax.f32 %v822_v15, %v823_v31  ;;  %v912_v36 = vmax.f32 %v910_v4, %v911_v48  ;;  %v845_v27 = vrot.slane %v844_v40, 2  ;;  %v965_v43 = vsub.f32 %v2353_v32, %v818_v3 }
 0x1d7   : > { %v1089_v57 = vrot.slane %v2418_v50, 4  ;;  %v840_v51 = vmax.f32 %v838_v34, %v839_v38  ;;  %v2430_v14 = vpop.eup %1871  ;;  %v930_v47 = vmax.f32 %v928_v45, %v929_v22  ;;  %v924_v9 = vmax.f32 %v922_v46, %v923_v53 }
 0x1d8   : > { %v830_v6 = vmax.f32 %v828_v52, %v829_v39  ;;  %v2433_v35 = vadd.f32 %v1343_v18, %v1342_v62  ;;  %v835_v30 = vrot.slane %v834_v60, 1  ;;  %v939_v15 = vrot.slane %v2425_v10, 4 }
 0x1d9   : > { %v1090_v16 = vadd.f32 %v2418_v50, %v1089_v57  ;;  %v1313_v49 = vmul.f32 %v1281_v42, %v2127_v33  ;;  %v966_v4 = vsub.f32 %v2351_v20, %v824_v63  ;;  %v841_v31 = vrot.slane %v840_v51, 1 }
 0x1da   : > { %v933_v61 = vrot.slane %v2428_v5, 4  ;;  %v982_v48 = vsub.f32 %v2342_v55, %v920_v37  ;;  %v913_v32 = vrot.slane %v912_v36, 1  ;;  %v846_v22 = vmax.f32 %v844_v40, %v845_v27 }
 0x1db   : > { %v1091_v23 = vrot.slane %v1090_v16, 2  ;;  %v1005_v45 = vmul.f32 1.442695, %v965_v43  ;;  %v931_v46 = vrot.slane %v930_v47, 1  ;;  %v925_v62 = vrot.slane %v924_v9, 1 }
 0x1dc   : > { %v967_v52 = vsub.f32 %v2387_v1, %v830_v6  ;;  %v836_v3 = vmax.f32 %v834_v60, %v835_v30  ;;  %v940_v53 = vmax.f32 %v2425_v10, %v939_v15  ;;  %v934_v33 = vmax.f32 %v2428_v5, %v933_v61 }
 0x1dd   : > { %v1092_v34 = vadd.f32 %v1091_v23, %v1090_v16  ;;  %v1314_v42 = vmul.f32 %v1282_v58, %v2122_v29  ;;  %v1365_v20 = vrot.slane %v1313_v49, 4  ;;  %v1007_v39 = vmul.f32 1.442695, %v966_v4 }
 0x1de   : > { %v842_v57 = vmax.f32 %v840_v51, %v841_v31  ;;  %v1874_v37 = vpop.eup %1873  ;;  %v1039_v55 = vmul.f32 1.442695, %v982_v48  ;;  %v914_v40 = vmax.f32 %v912_v36, %v913_v32  ;;  %v847_v63 = vrot.slane %v846_v22, 1 }
 0x1df   : > { %v1093_v18 = vrot.slane %v1092_v34, 1  ;;  %1875 = vpow2.f32 %v1005_v45  ;;  %v932_v16 = vmax.f32 %v930_v47, %v931_v46  ;;  %v926_v27 = vmax.f32 %v924_v9, %v925_v62  ;;  %v2458_v62 = vpop.xlane.xlu0 %731 }
 0x1e0   : > { %v1009_v1 = vmul.f32 1.442695, %v967_v52  ;;  %v968_v60 = vsub.f32 %v2368_v21, %v836_v3  ;;  %v941_v43 = vrot.slane %v940_v53, 2  ;;  %v935_v6 = vrot.slane %v934_v33, 2 }
 0x1e1   : > { %v1094_v38 = vadd.f32 %v1093_v18, %v1092_v34  ;;  %v1355_v23 = vrot.slane %v2420_v28, 2  ;;  %v1284_v29 = vmul.f32 %v1874_v37, %v2356_v54  ;;  %v969_v51 = vsub.f32 %v2405_v59, %v842_v57 }
 0x1e2   : > { %v1371_v58 = vrot.slane %v1314_v42, 4  ;;  %v981_v36 = vsub.f32 %v2359_v19, %v914_v40  ;;  %v848_v30 = vmax.f32 %v846_v22, %v847_v63  ;;  %v1366_v47 = vadd.f32 %v1365_v20, %v1313_v49 }
 0x1e3   : > { %1877 = vrcp.f32 %v1094_v38  ;;  %v984_v9 = vsub.f32 %v2362_v26, %v932_v16  ;;  %v936_v15 = vmax.f32 %v934_v33, %v935_v6  ;;  %v1193_v21 = vrot.slane %v2401_v25, 2 }
 0x1e4   : > { %1879 = vpow2.f32 %v1007_v39  ;;  %v983_v4 = vsub.f32 %v2372_v41, %v926_v27  ;;  %v1011_v31 = vmul.f32 1.442695, %v968_v60  ;;  %v942_v61 = vmax.f32 %v940_v53, %v941_v43 }
 0x1e5   : > { %1881 = vpow2.f32 %v1039_v55  ;;  %v1351_v54 = vrot.slane %v2409_v13, 1  ;;  %v1356_v59 = vadd.f32 %v1355_v23, %v2420_v28  ;;  %v1316_v48 = vmul.f32 %v1284_v29, %v2152_v0 }
 0x1e6   : > { %1883 = vpow2.f32 %v1009_v1  ;;  %v1013_v34 = vmul.f32 1.442695, %v969_v51  ;;  %v1372_v19 = vadd.f32 %v1371_v58, %v1314_v42  ;;  %v1037_v32 = vmul.f32 1.442695, %v981_v36  ;;  %v2484_v51 = vpop.xlane.xlu1 %729 }
 0x1e7   : > { %v970_v49 = vsub.f32 %v2389_v11, %v848_v30  ;;  %v937_v26 = vrot.slane %v936_v15, 1  ;;  %v1361_v22 = vrot.slane %v2414_v7, 2  ;;  %v1345_v45 = vrot.slane %v2433_v35, 1 }
 0x1e8   : > { %v1367_v46 = vrot.slane %v1366_v47, 2  ;;  %v1043_v41 = vmul.f32 1.442695, %v984_v9  ;;  %v1041_v52 = vmul.f32 1.442695, %v983_v4  ;;  %1885 = vpow2.f32 %v1011_v31 }
 0x1e9   : > { %v943_v18 = vrot.slane %v942_v61, 1  ;;  %v938_v28 = vmax.f32 %v936_v15, %v937_v26  ;;  %v1357_v3 = vrot.slane %v1356_v59, 1  ;;  %v1185_v0 = vrot.slane %v2430_v14, 4 }
 0x1ea   : > { %v1383_v53 = vrot.slane %v1316_v48, 4  ;;  %1887 = vpow2.f32 %v1013_v34  ;;  %v1373_v33 = vrot.slane %v1372_v19, 2  ;;  %v1015_v11 = vmul.f32 1.442695, %v970_v49 }
 0x1eb   : > { %1889 = vpow2.f32 %v1037_v32  ;;  %v855_v42 = vrot.slane %v2458_v62, 4  ;;  %v1362_v20 = vadd.f32 %v1361_v22, %v2414_v7  ;;  %v1346_v39 = vadd.f32 %v1345_v45, %v2433_v35 }
 0x1ec   : > { %1891 = vpow2.f32 %v1043_v41  ;;  %v985_v57 = vsub.f32 %v2428_v5, %v938_v28  ;;  %v2465_v37 = vpop.eup %1875  ;;  %v1368_v55 = vadd.f32 %v1367_v46, %v1366_v47  ;;  %v944_v38 = vmax.f32 %v942_v61, %v943_v18 }
 0x1ed   : > { %1893 = vpow2.f32 %v1041_v52  ;;  %v856_v40 = vmax.f32 %v2458_v62, %v855_v42  ;;  %v1352_v16 = vadd.f32 %v1351_v54, %v2409_v13  ;;  %v2470_v27 = vadd.f32 %v1193_v21, %v2401_v25 }
 0x1ee   : > { %v1186_v7 = vadd.f32 %v2430_v14, %v1185_v0  ;;  %v1384_v35 = vadd.f32 %v1383_v53, %v1316_v48  ;;  %v1358_v5 = vadd.f32 %v1357_v3, %v1356_v59  ;;  %v1374_v60 = vadd.f32 %v1373_v33, %v1372_v19 }
 0x1ef   : > { %1895 = vpow2.f32 %v1015_v11  ;;  %v1566_v23 = vsel %vm1565_vm1, %v1352_v16, %v1346_v39  ;;  %v1101_v25 = vrot.slane %v2465_v37, 4  ;;  %v1045_v13 = vmul.f32 1.442695, %v985_v57 }
 0x1f0   : > { %v1878_v63 = vpop.eup %1877  ;;  %v857_v29 = vrot.slane %v856_v40, 2  ;;  %v1363_v36 = vrot.slane %v1362_v20, 1  ;;  %v1369_v30 = vrot.slane %v1368_v55, 1  ;;  %v986_v47 = vsub.f32 %v2425_v10, %v944_v38 }
 0x1f1   : > { %v2473_v1 = vpop.eup %1879  ;;  %v1283_v43 = vmul.f32 %v1878_v63, %v2418_v50  ;;  %v1187_v9 = vrot.slane %v1186_v7, 2  ;;  %v1385_v15 = vrot.slane %v1384_v35, 2  ;;  %v1568_v31 = vsel %vm1567_vm2, %v1358_v5, %v1566_v23 }
 0x1f2   : > { %v2476_v6 = vpop.eup %1881  ;;  %v1107_v21 = vrot.slane %v2473_v1, 4  ;;  %v858_v4 = vmax.f32 %v856_v40, %v857_v29  ;;  %v1375_v61 = vrot.slane %v1374_v60, 1  ;;  %v849_v59 = vrot.slane %v2484_v51, 4 }
 0x1f3   : > { %v2486_v58 = vpop.eup %1883  ;;  %v1315_v50 = vmul.f32 %v1283_v43, %v2162_v12  ;;  %v1203_v48 = vrot.slane %v2476_v6, 4  ;;  %v1102_v34 = vadd.f32 %v2465_v37, %v1101_v25  ;;  %1897 = vpow2.f32 %v1045_v13 }
 0x1f4   : > { %v1113_v12 = vrot.slane %v2486_v58, 4  ;;  %v1364_v10 = vadd.f32 %v1363_v36, %v1362_v20  ;;  %v1370_v19 = vadd.f32 %v1369_v30, %v1368_v55  ;;  %v1047_v49 = vmul.f32 1.442695, %v986_v47 }
 0x1f5   : > { %v1377_v54 = vrot.slane %v1315_v50, 4  ;;  %v2497_v26 = vpop.eup %1885  ;;  %v1195_v22 = vrot.slane %v2470_v27, 1  ;;  %v1386_v45 = vadd.f32 %v1385_v15, %v1384_v35  ;;  %v1108_v46 = vadd.f32 %v2473_v1, %v1107_v21 }
 0x1f6   : > { %v859_v41 = vrot.slane %v858_v4, 1  ;;  %v1570_v18 = vsel %vm1569_vm3, %v1364_v10, %v1568_v31  ;;  %v1188_v28 = vadd.f32 %v1187_v9, %v1186_v7  ;;  %v850_v0 = vmax.f32 %v2484_v51, %v849_v59 }
 0x1f7   : > { %v1378_v32 = vadd.f32 %v1377_v54, %v1315_v50  ;;  %v2501_v52 = vpop.eup %1887  ;;  %v1376_v33 = vadd.f32 %v1375_v61, %v1374_v60  ;;  %v1204_v11 = vadd.f32 %v2476_v6, %v1203_v48  ;;  %v1103_v42 = vrot.slane %v1102_v34, 2 }
 0x1f8   : > { %v2510_v53 = vpop.eup %1889  ;;  %v1114_v20 = vadd.f32 %v2486_v58, %v1113_v12  ;;  %v1572_v57 = vsel %vm1571_vm4, %v1370_v19, %v1570_v18  ;;  %v1119_v38 = vrot.slane %v2497_v26, 4  ;;  %1899 = vpow2.f32 %v1047_v49 }
 0x1f9   : > { %v1379_v3 = vrot.slane %v1378_v32, 2  ;;  %v2514_v39 = vpop.eup %1891  ;;  %v1387_v63 = vrot.slane %v1386_v45, 1  ;;  %v1109_v16 = vrot.slane %v1108_v46, 2  ;;  %v1125_v7 = vrot.slane %v2501_v52, 4 }
 0x1fa   : > { %v2518_v40 = vpop.eup %1893  ;;  %v860_v35 = vmax.f32 %v858_v4, %v859_v41  ;;  %v1189_v5 = vrot.slane %v1188_v28, 1  ;;  %v1197_v43 = vrot.slane %v2510_v53, 4  ;;  %v851_v23 = vrot.slane %v850_v0, 2 }
 0x1fb   : > { %v1380_v55 = vadd.f32 %v1379_v3, %v1378_v32  ;;  %v1205_v13 = vrot.slane %v1204_v11, 2  ;;  %v1574_v29 = vsel %vm1573_vm5, %v1376_v33, %v1572_v57  ;;  %v1104_v36 = vadd.f32 %v1103_v42, %v1102_v34 }
 0x1fc   : > { %v2523_v25 = vpop.eup %1895  ;;  %v1115_v30 = vrot.slane %v1114_v20, 2  ;;  %v1215_v47 = vrot.slane %v2514_v39, 4  ;;  %v1209_v9 = vrot.slane %v2518_v40, 4  ;;  %v1120_v15 = vadd.f32 %v2497_v26, %v1119_v38 }
 0x1fd   : > { %v1381_v60 = vrot.slane %v1380_v55, 1  ;;  %v1388_v21 = vadd.f32 %v1387_v63, %v1386_v45  ;;  %v1110_v4 = vadd.f32 %v1109_v16, %v1108_v46  ;;  %v1126_v31 = vadd.f32 %v2501_v52, %v1125_v7  ;;  %v2548_v63 = vpop.xlane.xlu0 %761 }
 0x1fe   : > { %v972_v61 = vsub.f32 %v2458_v62, %v860_v35  ;;  %v1198_v59 = vadd.f32 %v2510_v53, %v1197_v43  ;;  %v1131_v48 = vrot.slane %v2523_v25, 4  ;;  %v852_v34 = vmax.f32 %v850_v0, %v851_v23 }
 0x1ff   : > { %v1382_v50 = vadd.f32 %v1381_v60, %v1380_v55  ;;  %v1196_v12 = vadd.f32 %v1195_v22, %v2470_v27  ;;  %v1105_v19 = vrot.slane %v1104_v36, 1  ;;  %v1116_v32 = vadd.f32 %v1115_v30, %v1114_v20 }
 0x200   : > { %v2541_v49 = vpop.eup %1897  ;;  %v1190_v45 = vadd.f32 %v1189_v5, %v1188_v28  ;;  %v1210_v46 = vadd.f32 %v2518_v40, %v1209_v9  ;;  %v1121_v62 = vrot.slane %v1120_v15, 2  ;;  %v1206_v41 = vadd.f32 %v1205_v13, %v1204_v11  ;;  %v2552_v13 = vpop.xlane.xlu1 %763 }
 0x201   : > { %v1576_v54 = vsel %vm1575_vm6, %v1382_v50, %v1574_v29  ;;  %v1111_v18 = vrot.slane %v1110_v4, 1  ;;  %v1127_v3 = vrot.slane %v1126_v31, 2  ;;  %v1019_v33 = vmul.f32 1.442695, %v972_v61 }
 0x202   : > { %v1578_v10 = vsel %vm1577_vm7, %v1388_v21, %v1576_v54  ;;  %v1216_v42 = vadd.f32 %v2514_v39, %v1215_v47  ;;  %v1199_v0 = vrot.slane %v1198_v59, 2  ;;  %v1132_v27 = vadd.f32 %v2523_v25, %v1131_v48 }
 0x203   : > { %1604 = vst [vmem:[%s2532_s12] sm:$0xff] %v1578_v10  ;;  %v853_v22 = vrot.slane %v852_v34, 1  ;;  %1901 = vrcp.f32 %v1196_v12  ;;  %v1106_v57 = vadd.f32 %v1105_v19, %v1104_v36  ;;  %v1117_v20 = vrot.slane %v1116_v32, 1 }
 0x204   : > { %v1221_v55 = vrot.slane %v2541_v49, 4  ;;  %1903 = vrcp.f32 %v1190_v45  ;;  %v1211_v28 = vrot.slane %v1210_v46, 2  ;;  %v1122_v38 = vadd.f32 %v1121_v62, %v1120_v15 }
 0x205   : > { %v2550_v11 = vpop.eup %1899  ;;  %v1207_v16 = vrot.slane %v1206_v41, 1  ;;  %v1112_v7 = vadd.f32 %v1111_v18, %v1110_v4  ;;  %v1128_v35 = vadd.f32 %v1127_v3, %v1126_v31  ;;  %1905 = vpow2.f32 %v1019_v33 }
 0x206   : > { %v1217_v5 = vrot.slane %v1216_v42, 2  ;;  %v1200_v60 = vadd.f32 %v1199_v0, %v1198_v59  ;;  %v1133_v43 = vrot.slane %v1132_v27, 2  ;;  %v854_v23 = vmax.f32 %v852_v34, %v853_v22 }
 0x207   : > { %1907 = vrcp.f32 %v1106_v57  ;;  %v1118_v29 = vadd.f32 %v1117_v20, %v1116_v32  ;;  %v1222_v36 = vadd.f32 %v2541_v49, %v1221_v55  ;;  %v945_v30 = vrot.slane %v2548_v63, 4 }
 0x208   : > { %v1212_v50 = vadd.f32 %v1211_v28, %v1210_v46  ;;  %v1123_v47 = vrot.slane %v1122_v38, 1  ;;  %v1227_v9 = vrot.slane %v2550_v11, 4  ;;  %v971_v15 = vsub.f32 %v2484_v51, %v854_v23 }
 0x209   : > { %1909 = vrcp.f32 %v1112_v7  ;;  %v1129_v21 = vrot.slane %v1128_v35, 1  ;;  %v946_v4 = vmax.f32 %v2548_v63, %v945_v30  ;;  %v951_v31 = vrot.slane %v2552_v13, 4 }
 0x20a   : > { %v1208_v61 = vadd.f32 %v1207_v16, %v1206_v41  ;;  %v1201_v54 = vrot.slane %v1200_v60, 1  ;;  %v1134_v59 = vadd.f32 %v1133_v43, %v1132_v27  ;;  %v1017_v48 = vmul.f32 1.442695, %v971_v15 }
 0x20b   : > { %1911 = vrcp.f32 %v1118_v29  ;;  %v1223_v34 = vrot.slane %v1222_v36, 2  ;;  %v947_v12 = vrot.slane %v946_v4, 2  ;;  %v952_v10 = vmax.f32 %v2552_v13, %v951_v31 }
 0x20c   : > { %v1218_v19 = vadd.f32 %v1217_v5, %v1216_v42  ;;  %v1213_v32 = vrot.slane %v1212_v50, 1  ;;  %v1124_v45 = vadd.f32 %v1123_v47, %v1122_v38  ;;  %v1228_v51 = vadd.f32 %v2550_v11, %v1227_v9 }
 0x20d   : > { %v1130_v46 = vadd.f32 %v1129_v21, %v1128_v35  ;;  %1913 = vpow2.f32 %v1017_v48  ;;  %v948_v62 = vmax.f32 %v946_v4, %v947_v12  ;;  %v953_v18 = vrot.slane %v952_v10, 2 }
 0x20e   : > { %v1202_v3 = vadd.f32 %v1201_v54, %v1200_v60  ;;  %v1135_v33 = vrot.slane %v1134_v59, 1  ;;  %1915 = vrcp.f32 %v1208_v61  ;;  %v1224_v41 = vadd.f32 %v1223_v34, %v1222_v36 }
 0x20f   : > { %v949_v0 = vrot.slane %v948_v62, 1  ;;  %v954_v27 = vmax.f32 %v952_v10, %v953_v18  ;;  %v1219_v57 = vrot.slane %v1218_v19, 1  ;;  %1917 = vrcp.f32 %v1124_v45 }
 0x210   : > { %v1902_v22 = vpop.eup %1901  ;;  %v1229_v20 = vrot.slane %v1228_v51, 2  ;;  %v1214_v42 = vadd.f32 %v1213_v32, %v1212_v50  ;;  %1919 = vrcp.f32 %v1130_v46  ;;  %v1136_v7 = vadd.f32 %v1135_v33, %v1134_v59 }
 0x211   : > { %v1904_v55 = vpop.eup %1903  ;;  %v950_v28 = vmax.f32 %v948_v62, %v949_v0  ;;  %v955_v38 = vrot.slane %v954_v27, 1  ;;  %1921 = vrcp.f32 %v1202_v3  ;;  %v1225_v35 = vrot.slane %v1224_v41, 1 }
 0x212   : > { %v2562_v16 = vpop.eup %1905  ;;  %v1220_v23 = vadd.f32 %v1219_v57, %v1218_v19  ;;  %v1230_v29 = vadd.f32 %v1229_v20, %v1228_v51  ;;  %1923 = vrcp.f32 %v1214_v42  ;;  %v1300_v9 = vmul.f32 %v1902_v22, %v2377_v8 }
 0x213   : > { %v1143_v5 = vrot.slane %v2562_v16, 4  ;;  %v987_v60 = vsub.f32 %v2548_v63, %v950_v28  ;;  %v956_v36 = vmax.f32 %v954_v27, %v955_v38  ;;  %1925 = vrcp.f32 %v1136_v7 }
 0x214   : > { %v1908_v43 = vpop.eup %1907  ;;  %v1299_v21 = vmul.f32 %v1904_v55, %v2430_v14  ;;  %v1226_v4 = vadd.f32 %v1225_v35, %v1224_v41  ;;  %v1231_v54 = vrot.slane %v1230_v29, 1  ;;  %v1332_v8 = vmul.f32 %v1300_v9, %v2137_v44 }
 0x215   : > { %v1144_v30 = vadd.f32 %v2562_v16, %v1143_v5  ;;  %v1049_v50 = vmul.f32 1.442695, %v987_v60  ;;  %v988_v15 = vsub.f32 %v2552_v13, %v956_v36  ;;  %v1285_v61 = vmul.f32 %v1908_v43, %v2465_v37  ;;  %v2682_v5 = vld [vmem:[#allocation6_spill] sm:$0xff] }
 0x216   : > { %v1910_v47 = vpop.eup %1909  ;;  %v1331_v37 = vmul.f32 %v1299_v21, %v2147_v56  ;;  %v1232_v45 = vadd.f32 %v1231_v54, %v1230_v29  ;;  %v1479_v18 = vrot.slane %v1332_v8, 4 }
 0x217   : > { %v1145_v31 = vrot.slane %v1144_v30, 2  ;;  %1927 = vpow2.f32 %v1049_v50  ;;  %v1051_v59 = vmul.f32 1.442695, %v988_v15  ;;  %v1286_v48 = vmul.f32 %v1910_v47, %v2473_v1  ;;  %v2684_v50 = vld [vmem:[#allocation4_spill] sm:$0xff] }
 0x218   : > { %v1912_v63 = vpop.eup %1911  ;;  %1929 = vrcp.f32 %v1220_v23  ;;  %v1317_v32 = vmul.f32 %v1285_v61, %v2167_v17  ;;  %v1473_v0 = vrot.slane %v1331_v37, 4  ;;  %v2585_v20 = vadd.f32 %v1479_v18, %v1332_v8  ;;  %v2683_v23 = vld [vmem:[#allocation8_spill] sm:$0xff]  ;;  %v2687_v18 = vld [vmem:[#allocation3_spill] sm:$0xff] }
 0x219   : > { %v1146_v34 = vadd.f32 %v1145_v31, %v1144_v30  ;;  %1931 = vpow2.f32 %v1051_v59  ;;  %v1287_v13 = vmul.f32 %v1912_v63, %v2486_v58  ;;  %v1318_v1 = vmul.f32 %v1286_v48, %v2172_v24 }
 0x21a   : > { %v2572_v12 = vpop.eup %1913  ;;  %1933 = vrcp.f32 %v1226_v4  ;;  %v1389_v56 = vrot.slane %v1317_v32, 4  ;;  %v2591_v35 = vadd.f32 %v1473_v0, %v1331_v37  ;;  %v2686_v37 = vld [vmem:[#allocation7_spill] sm:$0xff] }
 0x21b   : > { %v1147_v14 = vrot.slane %v1146_v34, 1  ;;  %v1137_v10 = vrot.slane %v2572_v12, 4  ;;  %v1916_v19 = vpop.eup %1915  ;;  %v1319_v33 = vmul.f32 %v1287_v13, %v2202_v2  ;;  %v1395_v27 = vrot.slane %v1318_v1, 4 }
 0x21c   : > { %v1918_v51 = vpop.eup %1917  ;;  %v1302_v58 = vmul.f32 %v1916_v19, %v2476_v6  ;;  %v2681_v6 = vld [vmem:[#allocation2_spill] sm:$0xff]  ;;  %v1475_v8 = vrot.slane %v2591_v35, 2 }
 0x21d   : > { %v1148_v46 = vadd.f32 %v1147_v14, %v1146_v34  ;;  %v1138_v62 = vadd.f32 %v2572_v12, %v1137_v10  ;;  %v1920_v44 = vpop.eup %1919  ;;  %v1288_v17 = vmul.f32 %v1918_v51, %v2497_v26  ;;  %v1401_v2 = vrot.slane %v1319_v33, 4  ;;  %v2685_v10 = vld [vmem:[#allocation5_spill] sm:$0xff] }
 0x21e   : > { %v1922_v3 = vpop.eup %1921  ;;  %v1289_v24 = vmul.f32 %v1920_v44, %v2501_v52  ;;  %v1334_v28 = vmul.f32 %v1302_v58, %v2681_v6  ;;  %v1390_v26 = vadd.f32 %v1389_v56, %v1317_v32  ;;  %v1396_v52 = vadd.f32 %v1395_v27, %v1318_v1  ;;  %v2688_v6 = vld [vmem:[#allocation10_spill] sm:$0xff] }
 0x21f   : > { %1935 = vrcp.f32 %v1148_v46  ;;  %v1139_v41 = vrot.slane %v1138_v62, 2  ;;  %v1924_v57 = vpop.eup %1923  ;;  %v1301_v55 = vmul.f32 %v1922_v3, %v2510_v53  ;;  %v1320_v60 = vmul.f32 %v1288_v17, %v2682_v5 }
 0x220   : > { %1937 = vrcp.f32 %v1232_v45  ;;  %v1926_v42 = vpop.eup %1925  ;;  %v1321_v29 = vmul.f32 %v1289_v24, %v2683_v23  ;;  %v1481_v53 = vrot.slane %v2585_v20, 2  ;;  %v1303_v9 = vmul.f32 %v1924_v57, %v2518_v40 }
 0x221   : > { %v1140_v22 = vadd.f32 %v1139_v41, %v1138_v62  ;;  %v1333_v47 = vmul.f32 %v1301_v55, %v2684_v50  ;;  %v1290_v15 = vmul.f32 %v1926_v42, %v2523_v25  ;;  %v1491_v4 = vrot.slane %v1334_v28, 4 }
 0x222   : > { %v1402_v31 = vadd.f32 %v1401_v2, %v1319_v33  ;;  %v1391_v54 = vrot.slane %v1390_v26, 2  ;;  %v1407_v48 = vrot.slane %v1320_v60, 4  ;;  %v1397_v13 = vrot.slane %v1396_v52, 2 }
 0x223   : > { %v1141_v38 = vrot.slane %v1140_v22, 1  ;;  %v1413_v40 = vrot.slane %v1321_v29, 4  ;;  %v1485_v25 = vrot.slane %v1333_v47, 4  ;;  %v1335_v19 = vmul.f32 %v1303_v9, %v2685_v10 }
 0x224   : > { %v2589_v7 = vpop.eup %1927  ;;  %v1322_v32 = vmul.f32 %v1290_v15, %v2686_v37  ;;  %v1492_v51 = vadd.f32 %v1491_v4, %v1334_v28  ;;  %v1403_v1 = vrot.slane %v1402_v31, 2  ;;  %v1392_v44 = vadd.f32 %v1391_v54, %v1390_v26  ;;  %v2689_v28 = vld [vmem:[#allocation11_spill] sm:$0xff] }
 0x225   : > { %v1930_v43 = vpop.eup %1929  ;;  %v1142_v36 = vadd.f32 %v1141_v38, %v1140_v22  ;;  %v1233_v30 = vrot.slane %v2589_v7, 4  ;;  %v1408_v58 = vadd.f32 %v1407_v48, %v1320_v60  ;;  %v1398_v0 = vadd.f32 %v1397_v13, %v1396_v52 }
 0x226   : > { %v2600_v21 = vpop.eup %1931  ;;  %v1304_v59 = vmul.f32 %v1930_v43, %v2514_v39  ;;  %v1414_v56 = vadd.f32 %v1413_v40, %v1321_v29  ;;  %v1486_v24 = vadd.f32 %v1485_v25, %v1333_v47  ;;  %v1497_v22 = vrot.slane %v1335_v19, 4 }
 0x227   : > { %1939 = vrcp.f32 %v1142_v36  ;;  %v1234_v63 = vadd.f32 %v2589_v7, %v1233_v30  ;;  %v1934_v61 = vpop.eup %1933  ;;  %v1239_v34 = vrot.slane %v2600_v21, 4  ;;  %v1419_v57 = vrot.slane %v1322_v32, 4 }
 0x228   : > { %v1305_v46 = vmul.f32 %v1934_v61, %v2541_v49  ;;  %v1336_v3 = vmul.f32 %v1304_v59, %v2687_v18  ;;  %v1404_v42 = vadd.f32 %v1403_v1, %v1402_v31  ;;  %v1493_v26 = vrot.slane %v1492_v51, 2  ;;  %v2690_v61 = vld [vmem:[#allocation9_spill] sm:$0xff] }
 0x229   : > { %v1235_v14 = vrot.slane %v1234_v63, 2  ;;  %v1240_v45 = vadd.f32 %v2600_v21, %v1239_v34  ;;  %v1409_v5 = vrot.slane %v1408_v58, 2  ;;  %v1415_v23 = vrot.slane %v1414_v56, 2 }
 0x22a   : > { %v1337_v49 = vmul.f32 %v1305_v46, %v2688_v6  ;;  %v1503_v52 = vrot.slane %v1336_v3, 4  ;;  %v1487_v36 = vrot.slane %v1486_v24, 2  ;;  %v1420_v30 = vadd.f32 %v1419_v57, %v1322_v32 }
 0x22b   : > { %v1236_v39 = vadd.f32 %v1235_v14, %v1234_v63  ;;  %v1241_v33 = vrot.slane %v1240_v45, 2  ;;  %v1393_v47 = vrot.slane %v1392_v44, 1  ;;  %v1498_v9 = vadd.f32 %v1497_v22, %v1335_v19 }
 0x22c   : > { %v1936_v62 = vpop.eup %1935  ;;  %v1405_v15 = vrot.slane %v1404_v42, 1  ;;  %v1509_v4 = vrot.slane %v1337_v49, 4  ;;  %v1410_v63 = vadd.f32 %v1409_v5, %v1408_v58  ;;  %v1494_v48 = vadd.f32 %v1493_v26, %v1492_v51 }
 0x22d   : > { %v1938_v41 = vpop.eup %1937  ;;  %v1292_v17 = vmul.f32 %v1936_v62, %v2562_v16  ;;  %v1237_v27 = vrot.slane %v1236_v39, 1  ;;  %v1242_v55 = vadd.f32 %v1241_v33, %v1240_v45  ;;  %v1399_v16 = vrot.slane %v1398_v0, 1  ;;  %v2691_v45 = vld [vmem:[#allocation12_spill] sm:$0xff] }
 0x22e   : > { %v1306_v60 = vmul.f32 %v1938_v41, %v2550_v11  ;;  %v1476_v11 = vadd.f32 %v1475_v8, %v2591_v35  ;;  %v1416_v34 = vadd.f32 %v1415_v23, %v1414_v56  ;;  %v1504_v14 = vadd.f32 %v1503_v52, %v1336_v3 }
 0x22f   : > { %v1324_v2 = vmul.f32 %v1292_v17, %v2689_v28  ;;  %v1238_v38 = vadd.f32 %v1237_v27, %v1236_v39  ;;  %v1243_v43 = vrot.slane %v1242_v55, 1  ;;  %v1400_v40 = vadd.f32 %v1399_v16, %v1398_v0 }
 0x230   : > { %v1338_v54 = vmul.f32 %v1306_v60, %v2690_v61  ;;  %v1488_v25 = vadd.f32 %v1487_v36, %v1486_v24  ;;  %v1421_v10 = vrot.slane %v1420_v30, 2  ;;  %v1499_v37 = vrot.slane %v1498_v9, 2  ;;  %v2692_v36 = vld [vmem:[#allocation15_spill] sm:$0xff] }
 0x231   : > { %v1431_v29 = vrot.slane %v1324_v2, 4  ;;  %1941 = vrcp.f32 %v1238_v38  ;;  %v1244_v50 = vadd.f32 %v1243_v43, %v1242_v55  ;;  %v1406_v19 = vadd.f32 %v1405_v15, %v1404_v42 }
 0x232   : > { %v1510_v32 = vadd.f32 %v1509_v4, %v1337_v49  ;;  %v1394_v46 = vadd.f32 %v1393_v47, %v1392_v44  ;;  %v1411_v39 = vrot.slane %v1410_v63, 1  ;;  %v1515_v62 = vrot.slane %v1338_v54, 4 }
 0x233   : > { %v1432_v59 = vadd.f32 %v1431_v29, %v1324_v2  ;;  %1943 = vrcp.f32 %v1244_v50  ;;  %v1482_v35 = vadd.f32 %v1481_v53, %v2585_v20  ;;  %v1477_v8 = vrot.slane %v1476_v11, 1 }
 0x234   : > { %v1940_v31 = vpop.eup %1939  ;;  %v1417_v51 = vrot.slane %v1416_v34, 1  ;;  %v1579_v3 = vsel %vm1565_vm1, %v1400_v40, %v1394_v46  ;;  %v1505_v58 = vrot.slane %v1504_v14, 2  ;;  %v1489_v33 = vrot.slane %v1488_v25, 1  ;;  %v2694_v40 = vld [vmem:[#allocation14_spill] sm:$0xff] }
 0x235   : > { %v1291_v13 = vmul.f32 %v1940_v31, %v2572_v12  ;;  %v1433_v18 = vrot.slane %v1432_v59, 2  ;;  %v1422_v41 = vadd.f32 %v1421_v10, %v1420_v30  ;;  %v1500_v0 = vadd.f32 %v1499_v37, %v1498_v9  ;;  %v2693_v9 = vld [vmem:[#allocation13_spill] sm:$0xff] }
 0x236   : > { %v1580_v56 = vsel %vm1567_vm2, %v1406_v19, %v1579_v3  ;;  %v1511_v17 = vrot.slane %v1510_v32, 2  ;;  %v1495_v27 = vrot.slane %v1494_v48, 1  ;;  %v1412_v24 = vadd.f32 %v1411_v39, %v1410_v63 }
 0x237   : > { %v1323_v1 = vmul.f32 %v1291_v13, %v2691_v45  ;;  %v1516_v22 = vadd.f32 %v1515_v62, %v1338_v54  ;;  %v1434_v57 = vadd.f32 %v1433_v18, %v1432_v59  ;;  %v1478_v55 = vadd.f32 %v1477_v8, %v1476_v11 }
 0x238   : > { %v1418_v42 = vadd.f32 %v1417_v51, %v1416_v34  ;;  %v1506_v6 = vadd.f32 %v1505_v58, %v1504_v14  ;;  %v1490_v49 = vadd.f32 %v1489_v33, %v1488_v25  ;;  %v1423_v28 = vrot.slane %v1422_v41, 1 }
 0x239   : > { %v1425_v12 = vrot.slane %v1323_v1, 4  ;;  %v1581_v2 = vsel %vm1569_vm3, %v1412_v24, %v1580_v56  ;;  %v1501_v38 = vrot.slane %v1500_v0, 1  ;;  %v1512_v26 = vadd.f32 %v1511_v17, %v1510_v32 }
 0x23a   : > { %v1483_v43 = vrot.slane %v1482_v35, 1  ;;  %v1496_v52 = vadd.f32 %v1495_v27, %v1494_v48  ;;  %v1517_v23 = vrot.slane %v1516_v22, 2  ;;  %v1435_v29 = vrot.slane %v1434_v57, 1 }
 0x23b   : > { %v1426_v44 = vadd.f32 %v1425_v12, %v1323_v1  ;;  %v1591_v30 = vsel %vm1575_vm6, %v1478_v55, %v2692_v36  ;;  %v1582_v50 = vsel %vm1571_vm4, %v1418_v42, %v1581_v2  ;;  %v1507_v4 = vrot.slane %v1506_v6, 1 }
 0x23c   : > { %v1593_v31 = vsel %vm1565_vm1, %v1496_v52, %v1490_v49  ;;  %v1424_v63 = vadd.f32 %v1423_v28, %v1422_v41  ;;  %v1513_v54 = vrot.slane %v1512_v26, 1  ;;  %v1518_v48 = vadd.f32 %v1517_v23, %v1516_v22 }
 0x23d   : > { %v1427_v20 = vrot.slane %v1426_v44, 2  ;;  %v1436_v34 = vadd.f32 %v1435_v29, %v1434_v57  ;;  %v1484_v25 = vadd.f32 %v1483_v43, %v1482_v35  ;;  %v1508_v39 = vadd.f32 %v1507_v4, %v1506_v6 }
 0x23e   : > { %v1942_v53 = vpop.eup %1941  ;;  %v1583_v13 = vsel %vm1573_vm5, %v1424_v63, %v1582_v50  ;;  %v1514_v1 = vadd.f32 %v1513_v54, %v1512_v26  ;;  %v1519_v62 = vrot.slane %v1518_v48, 1 }
 0x23f   : > { %v1428_v5 = vadd.f32 %v1427_v20, %v1426_v44  ;;  %v1307_v60 = vmul.f32 %v1942_v53, %v2589_v7  ;;  %v1502_v7 = vadd.f32 %v1501_v38, %v1500_v0 }
 0x240   : > { %v1944_v16 = vpop.eup %1943  ;;  %v1520_v58 = vadd.f32 %v1519_v62, %v1518_v48 }
 0x241   : > { %v1429_v47 = vrot.slane %v1428_v5, 1  ;;  %v1339_v15 = vmul.f32 %v1307_v60, %v2693_v9  ;;  %v1308_v61 = vmul.f32 %v1944_v16, %v2600_v21  ;;  %v1592_v21 = vsel %vm1577_vm7, %v1484_v25, %v1591_v30 }
 0x242   : > { %v1594_v45 = vsel %vm1567_vm2, %v1502_v7, %v1593_v31  ;;  %1606 = vst [vmem:[%s2532_s12 + $0x10] sm:$0xff] %v1592_v21 }
 0x243   : > { %v1430_v59 = vadd.f32 %v1429_v47, %v1428_v5  ;;  %v1521_v11 = vrot.slane %v1339_v15, 4  ;;  %v1340_v14 = vmul.f32 %v1308_v61, %v2694_v40  ;;  %v1595_v35 = vsel %vm1569_vm3, %v1508_v39, %v1594_v45 }
 0x244   : > { %v1596_v12 = vsel %vm1571_vm4, %v1514_v1, %v1595_v35 }
 0x245   : > { %v1584_v10 = vsel %vm1575_vm6, %v1430_v59, %v1583_v13  ;;  %v1522_v37 = vadd.f32 %v1521_v11, %v1339_v15  ;;  %v1527_v32 = vrot.slane %v1340_v14, 4  ;;  %v1597_v0 = vsel %vm1573_vm5, %v1520_v58, %v1596_v12 }
 0x246   : > { %v1585_v19 = vsel %vm1577_vm7, %v1436_v34, %v1584_v10 }
 0x247   : > { %1605 = vst [vmem:[%s2532_s12 + $0x8] sm:$0xff] %v1585_v19  ;;  %v1523_v46 = vrot.slane %v1522_v37, 2  ;;  %v1528_v18 = vadd.f32 %v1527_v32, %v1340_v14 }
 0x249   : > { %v1524_v8 = vadd.f32 %v1523_v46, %v1522_v37  ;;  %v1529_v51 = vrot.slane %v1528_v18, 2 }
 0x24b   : > { %v1525_v3 = vrot.slane %v1524_v8, 1  ;;  %v1530_v33 = vadd.f32 %v1529_v51, %v1528_v18 }
 0x24d   : > { %v1526_v41 = vadd.f32 %v1525_v3, %v1524_v8  ;;  %v1531_v56 = vrot.slane %v1530_v33, 1 }
 0x24f   : > { %v1598_v17 = vsel %vm1575_vm6, %v1526_v41, %v1597_v0  ;;  %v1532_v44 = vadd.f32 %v1531_v56, %v1530_v33 }
 0x251   : > { %v1599_v27 = vsel %vm1577_vm7, %v1532_v44, %v1598_v17 }
 0x252   : > { %1607 = vst [vmem:[%s2532_s12 + $0x18] sm:$0xff] %v1599_v27 }
 0x253 PF: > { %s14_s15 = sadd.s32 1, %s1951_s15  }
 0x254   : > { %p11_p5 = scmp.ge.s32.totalorder %s14_s15, 4  }
 0x256   :  { %13 = sbr.rel (!%p11_p5) target bundleno = 1 (0x1), region = 66 }

</bundles_post_ra>
